<compile_context>
chip_gen: v7x
topology: tpu7x:2x2x1
jax: 0.10.0
libtpu: 0.0.40
codegen_flags: <defaults>
</compile_context>

<pallas_src>
import functools

import numpy as np
import jax
import jax.numpy as jnp
from jax.experimental import pallas as pl
from jax.experimental.pallas import tpu as pltpu


# -----------------------------------------------------------------------------
# Init-time lowering: ConvTranspose2d -> dense matrix over flattened NCHW maps.
# -----------------------------------------------------------------------------
def _convT_dense_matrix(w_t, H, W, stride, pad):
    """Dense (Cin*H*W, Cout*Hout*Wout) matrix realizing PyTorch ConvTranspose2d
    with weight w_t of shape (Cin, Cout, KH, KW), acting on NCHW-flattened maps.

    out[n, co, oh, ow] = sum_{ci,ih,iw,kh,kw} x[n,ci,ih,iw] * w_t[ci,co,kh,kw]
                         where oh = ih*stride - pad + kh, ow = iw*stride - pad + kw.
    """
    w_t = np.asarray(w_t, np.float32)
    Cin, Cout, KH, KW = w_t.shape
    Hout = (H - 1) * stride - 2 * pad + KH
    Wout = (W - 1) * stride - 2 * pad + KW
    M = np.zeros((Cin * H * W, Cout * Hout * Wout), np.float32)
    ci = np.arange(Cin)
    co = np.arange(Cout)
    for ih in range(H):
        for iw in range(W):
            rows = ci * (H * W) + ih * W + iw
            for kh in range(KH):
                oh = ih * stride - pad + kh
                if not 0 <= oh < Hout:
                    continue
                for kw in range(KW):
                    ow = iw * stride - pad + kw
                    if not 0 <= ow < Wout:
                        continue
                    cols = co * (Hout * Wout) + oh * Wout + ow
                    M[np.ix_(rows, cols)] += w_t[:, :, kh, kw]
    return M, Hout, Wout


def init_generator_params(key, latent_shape, deconv_sizes, img_shape):
    """Deterministic DCGAN-style init (conv weights ~ N(0,0.02), BN gamma ~ N(1,0.02)),
    mirroring the PyTorch constructor's layer expansion."""
    specs = [(latent_shape,)] + list(deconv_sizes) + [(img_shape[0], 1, 4, 2, 1)]
    layer_cfgs = []
    for prev, curr in zip(specs, specs[1:]):
        cin = prev[0]
        cout, nb, k, s, p = curr
        for _ in range(nb):
            layer_cfgs.append((cin, cout, k, s, p))
            cin = cout

    params = []
    eps = 1e-5
    for idx, (cin, cout, k, s, p) in enumerate(layer_cfgs):
        key, k1, k2 = jax.random.split(key, 3)
        w = 0.02 * jax.random.normal(k1, (cin, cout, k, k), jnp.float32)
        is_final = idx == len(layer_cfgs) - 1
        if is_final:
            conv_bias = 0.02 * jax.random.normal(k2, (cout,), jnp.float32)
            params.append(dict(w=w, scale=jnp.ones((cout,), jnp.float32),
                               bias=conv_bias, stride=s, pad=p, act="tanh"))
        else:
            # Inference-mode BatchNorm fold with fresh running stats (mean=0, var=1).
            gamma = 1.0 + 0.02 * jax.random.normal(k2, (cout,), jnp.float32)
            beta = jnp.zeros((cout,), jnp.float32)
            params.append(dict(w=w, scale=gamma / jnp.sqrt(1.0 + eps),
                               bias=beta, stride=s, pad=p, act="relu"))
    return params


def fold_generator_params(params, latent_shape):
    """Precompute per-layer dense matmul operands for the fused kernel:
    BN scale is folded into the (bf16) weight matrix; per-channel bias is
    expanded to a lane-dense (1, Cout*Hout*Wout) row vector."""
    H = W = 1
    cin = latent_shape
    layers = []
    for lay in params:
        cout = lay["w"].shape[1]
        M, Hout, Wout = _convT_dense_matrix(lay["w"], H, W, lay["stride"], lay["pad"])
        col_scale = np.repeat(np.asarray(lay["scale"], np.float32), Hout * Wout)
        col_bias = np.repeat(np.asarray(lay["bias"], np.float32), Hout * Wout)
        M = M * col_scale[None, :]
        layers.append(dict(
            w=jnp.asarray(M, jnp.bfloat16),                       # MXU operand
            b=jnp.asarray(col_bias, jnp.float32).reshape(1, -1),  # f32 epilogue
            act=lay["act"],
        ))
        H, W, cin = Hout, Wout, cout
    return dict(layers=layers, out_chw=(cin, H, W))


# -----------------------------------------------------------------------------
# Fused Pallas kernel: (layer matmul + bias + activation) x num_layers.
# -----------------------------------------------------------------------------
def _fused_generator_kernel(*refs, num_layers, acts, bf16_tanh):
    z_ref = refs[0]
    out_ref = refs[1 + 2 * num_layers]
    # In-kernel bf16 cast of z: rides the free VPU slot, avoids a separate
    # XLA cast launch + HBM round-trip over z.
    h = z_ref[...].astype(jnp.bfloat16)              # (TB, latent)
    for li in range(num_layers):
        w_ref = refs[1 + 2 * li]                     # (Din, Dout), bf16
        b_ref = refs[2 + 2 * li]                     # (1, Dout),  f32
        acc = jnp.dot(h, w_ref[...], preferred_element_type=jnp.float32)
        acc = acc + b_ref[...]
        if acts[li] == "relu":
            # Carry inter-layer activation in bf16 (halves live vregs/VMEM; the
            # next matmul needs bf16 anyway, so this removes a cast).
            h = jnp.maximum(acc, 0.0).astype(jnp.bfloat16)
        else:
            # bf16 tanh keeps the EUP fully hidden under the matmul on v6e/v7x;
            # on v5e (no bf16 EUP) stay in f32.
            h = jnp.tanh(acc.astype(jnp.bfloat16)) if bf16_tanh else jnp.tanh(acc)
    out_ref[...] = h.astype(out_ref.dtype)


def _round_up(x, m):
    return (x + m - 1) // m * m


def _tpu_has_bf16_eup():
    """bf16 EUP/VPU exists on v6e/v7x but not v5e/v5p."""
    try:
        kind = jax.devices()[0].device_kind.lower()
    except Exception:
        return True
    return "v5" not in kind


def generator_forward(folded, z, *, block_batch=256, out_dtype=jnp.bfloat16):
    """PyTorch: img = z.view(N, latent, 1, 1); self.conv(img).  Returns NCHW.

    `block_batch` is a tuning knob (256-512 amortizes the ~0.35us grid-step
    overhead); `out_dtype` defaults to bf16 to halve HBM writeback (pass
    jnp.float32 if a downstream consumer needs it).
    """
    layers = folded["layers"]
    C, H, W = folded["out_chw"]
    N, latent = z.shape
    num_layers = len(layers)
    acts = tuple(l["act"] for l in layers)
    d_out = layers[-1]["w"].shape[1]

    # Batch tile on the sublane axis; lane axis is the flat C*H*W output (a
    # multiple of 128 => unmasked lane-dense stores).  For N >= 64 force at
    # least 2 grid steps so both v7x TensorCores get work (harmless extra
    # ~0.35us step on single-TC v5e/v6e).  VMEM: ~1 MiB resident weights +
    # O(TB * d_out) activations/output -- well inside default scoped VMEM.
    if N <= 64:
        TB = min(N, block_batch)
    else:
        TB = min(block_batch, _round_up(pl.cdiv(N, 2), 16))
    grid = (pl.cdiv(N, TB),)

    in_specs = [pl.BlockSpec((TB, latent), lambda i: (i, 0))]
    operands = [z]                                    # f32; cast happens in-kernel
    for lay in layers:
        d_in, d_o = lay["w"].shape
        in_specs.append(pl.BlockSpec((d_in, d_o), lambda i: (0, 0)))   # resident weights
        in_specs.append(pl.BlockSpec((1, d_o), lambda i: (0, 0)))      # resident bias
        operands.append(lay["w"])
        operands.append(lay["b"])

    # Advisory cost estimate so XLA can overlap surrounding ops with this
    # short, latency-bound kernel.
    flops = 2 * N * sum(int(l["w"].shape[0]) * int(l["w"].shape[1]) for l in layers)
    transcendentals = N * d_out  # final tanh
    bytes_accessed = (
        int(z.size) * 4
        + sum(int(l["w"].size) * 2 + int(l["b"].size) * 4 for l in layers)
        + N * d_out * jnp.dtype(out_dtype).itemsize
    )

    out = pl.pallas_call(
        functools.partial(_fused_generator_kernel, num_layers=num_layers,
                          acts=acts, bf16_tanh=_tpu_has_bf16_eup()),
        out_shape=jax.ShapeDtypeStruct((N, d_out), out_dtype),
        grid=grid,
        in_specs=in_specs,
        out_specs=pl.BlockSpec((TB, d_out), lambda i: (i, 0)),
        compiler_params=pltpu.CompilerParams(
            # Batch-tile axis is independent => shard across TensorCores (v7x).
            dimension_semantics=("parallel",),
        ),
        cost_estimate=pl.CostEstimate(flops=int(flops),
                                      transcendentals=int(transcendentals),
                                      bytes_accessed=int(bytes_accessed)),
    )(*operands)

    # Columns are already ordered (Cout, Hout, Wout) => pure reshape to NCHW.
    return out.reshape(N, C, H, W)


if __name__ == "__main__":
    key = jax.random.PRNGKey(0)
    kp, kz = jax.random.split(key)

    latent = 32
    deconv_sizes = [(16, 1, 4, 1, 0), (8, 1, 4, 2, 1)]
    img_shape = (3, 16, 16)

    raw_params = init_generator_params(kp, latent, deconv_sizes, img_shape)
    folded = fold_generator_params(raw_params, latent)

    z = jax.random.normal(kz, (2, latent), jnp.float32)

    img = generator_forward(folded, z)
    img = jax.block_until_ready(img)

    assert img.shape == (2, 3, 16, 16), img.shape
    assert bool(jnp.all(jnp.isfinite(img)))
    assert bool(jnp.all(jnp.abs(img.astype(jnp.float32)) <= 1.0))  # final Tanh
    print("KERNEL_OK")
</pallas_src>

<mosaic_0001>
module attributes {stable_mosaic.version = 11 : i64} {
  func.func @_fused_generator_kernel(%arg0: i32, %arg1: memref<2x32xf32, #tpu.memory_space<vmem>>, %arg2: memref<32x256xbf16, #tpu.memory_space<vmem>>, %arg3: memref<1x256xf32, #tpu.memory_space<vmem>>, %arg4: memref<256x512xbf16, #tpu.memory_space<vmem>>, %arg5: memref<1x512xf32, #tpu.memory_space<vmem>>, %arg6: memref<512x768xbf16, #tpu.memory_space<vmem>>, %arg7: memref<1x768xf32, #tpu.memory_space<vmem>>, %arg8: memref<2x768xbf16, #tpu.memory_space<vmem>>) attributes {dimension_semantics = [#tpu.dimension_semantics<parallel>], iteration_bounds = array<i64: 1>, scalar_prefetch = 0 : i64, scratch_operands = 0 : i64, tpu.core_type = #tpu.core_type<tc>, window_params = [{transform_indices = @transform_0, window_bounds = array<i64: 2, 32>}, {pipeline_mode = #tpu.pipeline_mode<synchronous>, transform_indices = @transform_1, window_bounds = array<i64: 32, 256>}, {pipeline_mode = #tpu.pipeline_mode<synchronous>, transform_indices = @transform_2, window_bounds = array<i64: 1, 256>}, {pipeline_mode = #tpu.pipeline_mode<synchronous>, transform_indices = @transform_3, window_bounds = array<i64: 256, 512>}, {pipeline_mode = #tpu.pipeline_mode<synchronous>, transform_indices = @transform_4, window_bounds = array<i64: 1, 512>}, {pipeline_mode = #tpu.pipeline_mode<synchronous>, transform_indices = @transform_5, window_bounds = array<i64: 512, 768>}, {pipeline_mode = #tpu.pipeline_mode<synchronous>, transform_indices = @transform_6, window_bounds = array<i64: 1, 768>}, {transform_indices = @transform_7, window_bounds = array<i64: 2, 768>}]} {
    %c0 = arith.constant 0 : index
    %c0_0 = arith.constant 0 : index
    %0 = vector.load %arg1[%c0, %c0_0] : memref<2x32xf32, #tpu.memory_space<vmem>>, vector<2x32xf32>
    %1 = arith.truncf %0 : vector<2x32xf32> to vector<2x32xbf16>
    %c0_1 = arith.constant 0 : index
    %c0_2 = arith.constant 0 : index
    %2 = vector.load %arg2[%c0_1, %c0_2] : memref<32x256xbf16, #tpu.memory_space<vmem>>, vector<32x256xbf16>
    %cst = arith.constant dense<0.000000e+00> : vector<2x256xf32>
    %3 = tpu.matmul %1, %2, %cst {dimension_numbers = #tpu.dot_dimension_numbers<[1], [0], [0], [1], [0, 0, 1, 1], [], []>} : vector<2x32xbf16>, vector<32x256xbf16>, vector<2x256xf32> -> vector<2x256xf32>
    %c0_3 = arith.constant 0 : index
    %c0_4 = arith.constant 0 : index
    %4 = vector.load %arg3[%c0_3, %c0_4] : memref<1x256xf32, #tpu.memory_space<vmem>>, vector<1x256xf32>
    %5 = vector.broadcast %4 : vector<1x256xf32> to vector<2x256xf32>
    %6 = arith.addf %3, %5 : vector<2x256xf32>
    %cst_5 = arith.constant 0.000000e+00 : f32
    %7 = vector.broadcast %cst_5 : f32 to vector<2x256xf32>
    %8 = arith.maximumf %6, %7 : vector<2x256xf32>
    %9 = arith.truncf %8 : vector<2x256xf32> to vector<2x256xbf16>
    %c0_6 = arith.constant 0 : index
    %c0_7 = arith.constant 0 : index
    %10 = vector.load %arg4[%c0_6, %c0_7] : memref<256x512xbf16, #tpu.memory_space<vmem>>, vector<256x512xbf16>
    %cst_8 = arith.constant dense<0.000000e+00> : vector<2x512xf32>
    %11 = tpu.matmul %9, %10, %cst_8 {dimension_numbers = #tpu.dot_dimension_numbers<[1], [0], [0], [1], [0, 0, 1, 1], [], []>} : vector<2x256xbf16>, vector<256x512xbf16>, vector<2x512xf32> -> vector<2x512xf32>
    %c0_9 = arith.constant 0 : index
    %c0_10 = arith.constant 0 : index
    %12 = vector.load %arg5[%c0_9, %c0_10] : memref<1x512xf32, #tpu.memory_space<vmem>>, vector<1x512xf32>
    %13 = vector.broadcast %12 : vector<1x512xf32> to vector<2x512xf32>
    %14 = arith.addf %11, %13 : vector<2x512xf32>
    %cst_11 = arith.constant 0.000000e+00 : f32
    %15 = vector.broadcast %cst_11 : f32 to vector<2x512xf32>
    %16 = arith.maximumf %14, %15 : vector<2x512xf32>
    %17 = arith.truncf %16 : vector<2x512xf32> to vector<2x512xbf16>
    %c0_12 = arith.constant 0 : index
    %c0_13 = arith.constant 0 : index
    %18 = vector.load %arg6[%c0_12, %c0_13] : memref<512x768xbf16, #tpu.memory_space<vmem>>, vector<512x768xbf16>
    %cst_14 = arith.constant dense<0.000000e+00> : vector<2x768xf32>
    %19 = tpu.matmul %17, %18, %cst_14 {dimension_numbers = #tpu.dot_dimension_numbers<[1], [0], [0], [1], [0, 0, 1, 1], [], []>} : vector<2x512xbf16>, vector<512x768xbf16>, vector<2x768xf32> -> vector<2x768xf32>
    %c0_15 = arith.constant 0 : index
    %c0_16 = arith.constant 0 : index
    %20 = vector.load %arg7[%c0_15, %c0_16] : memref<1x768xf32, #tpu.memory_space<vmem>>, vector<1x768xf32>
    %21 = vector.broadcast %20 : vector<1x768xf32> to vector<2x768xf32>
    %22 = arith.addf %19, %21 : vector<2x768xf32>
    %23 = arith.truncf %22 : vector<2x768xf32> to vector<2x768xbf16>
    %24 = math.tanh %23 : vector<2x768xbf16>
    %c0_17 = arith.constant 0 : index
    %c0_18 = arith.constant 0 : index
    %25 = vector.load %arg8[%c0_17, %c0_18] : memref<2x768xbf16, #tpu.memory_space<vmem>>, vector<2x768xbf16>
    tpu.vector_store %arg8[%c0_17, %c0_18], %24 {strides = array<i32>} : memref<2x768xbf16, #tpu.memory_space<vmem>>, vector<2x768xbf16>,
    return
  }
  func.func @transform_0(%arg0: i32) -> (i32, i32) {
    %c0_i32 = arith.constant 0 : i32
    %c0_i32_0 = arith.constant 0 : i32
    return %arg0, %c0_i32 : i32, i32
  }
  func.func @transform_1(%arg0: i32) -> (i32, i32) {
    %c0_i32 = arith.constant 0 : i32
    %c0_i32_0 = arith.constant 0 : i32
    %c0_i32_1 = arith.constant 0 : i32
    return %c0_i32, %c0_i32_0 : i32, i32
  }
  func.func @transform_2(%arg0: i32) -> (i32, i32) {
    %c0_i32 = arith.constant 0 : i32
    %c0_i32_0 = arith.constant 0 : i32
    %c0_i32_1 = arith.constant 0 : i32
    return %c0_i32, %c0_i32_0 : i32, i32
  }
  func.func @transform_3(%arg0: i32) -> (i32, i32) {
    %c0_i32 = arith.constant 0 : i32
    %c0_i32_0 = arith.constant 0 : i32
    %c0_i32_1 = arith.constant 0 : i32
    return %c0_i32, %c0_i32_0 : i32, i32
  }
  func.func @transform_4(%arg0: i32) -> (i32, i32) {
    %c0_i32 = arith.constant 0 : i32
    %c0_i32_0 = arith.constant 0 : i32
    %c0_i32_1 = arith.constant 0 : i32
    return %c0_i32, %c0_i32_0 : i32, i32
  }
  func.func @transform_5(%arg0: i32) -> (i32, i32) {
    %c0_i32 = arith.constant 0 : i32
    %c0_i32_0 = arith.constant 0 : i32
    %c0_i32_1 = arith.constant 0 : i32
    return %c0_i32, %c0_i32_0 : i32, i32
  }
  func.func @transform_6(%arg0: i32) -> (i32, i32) {
    %c0_i32 = arith.constant 0 : i32
    %c0_i32_0 = arith.constant 0 : i32
    %c0_i32_1 = arith.constant 0 : i32
    return %c0_i32, %c0_i32_0 : i32, i32
  }
  func.func @transform_7(%arg0: i32) -> (i32, i32) {
    %c0_i32 = arith.constant 0 : i32
    %c0_i32_0 = arith.constant 0 : i32
    return %arg0, %c0_i32 : i32, i32
  }
}

</mosaic_0001>

<bundles_post_ra>
// kernel: tpu_custom_call.1
= control target key start
LH: loop header
LB: loop body
LE: loop exit
PB: predicated region body
PF: predicated region fallthrough
CT: control target
= control target key end

     0   :  { %12 = vsyncpa [#allocation3], 0  ;;  %s3206_s0 = inlined_call_operand.hbm [shape: f32[2,32], index: 0, kind: input, shape index: {}]   ;;  %s3207_s1 = inlined_call_operand.hbm [shape: bf16[32,256], index: 1, kind: input, shape index: {}]   ;;  %s3208_s2 = inlined_call_operand.hbm [shape: f32[1,256], index: 2, kind: input, shape index: {}]   ;;  %s3209_s3 = inlined_call_operand.hbm [shape: bf16[256,512], index: 3, kind: input, shape index: {}]   ;;  %s3210_s4 = inlined_call_operand.vmem [shape: f32[1,512], index: 4, kind: input, shape index: {}]   ;;  %s3211_s5 = inlined_call_operand.hbm [shape: bf16[512,768], index: 5, kind: input, shape index: {}]   ;;  %s3212_s6 = inlined_call_operand.vmem [shape: f32[1,768], index: 6, kind: input, shape index: {}]   ;;  %s3213_s7 = inlined_call_operand.hbm [shape: bf16[2,768], index: 7, kind: output, shape index: {}]  }
   0x1   :  { %13 = vsyncpa [#allocation6], 0 }
   0x2   :  { %14 = vsyncpa [#allocation9], 0 }
   0x3   :  { %15 = vsyncpa [#allocation4], 0  ;;  %s3017_s24 = smov [#allocation5]   ;;  %s2877_s28 = scalar_lea.hbm %s3207_s1, 512 }
   0x4   :  { %s31_s25 = sshll.u32 %s3017_s24, 4  ;;  %p2878_p0 = scmp.ne.s32.totalorder %s3207_s1, %s2877_s28  ;;  %s32_s25 = int_to_ptr.vmem [resolvable:$true] %s31_s25 }
   0x5   :  { %p2881_p1 = scmp.lt.u32.totalorder %s2877_s28, %s3207_s1 }
   0x7   :  { %p2883_p2 = pnand %p2881_p1, %p2878_p0 }
   0x9   :  { %2886 = shalt.err (!%p2883_p2)
}
   0xa   :  { %s2887_s10 = scalar_lea.vmem %s32_s25, 512  ;;  %p2892_p4 = scmp.lt.s32.totalorder %s32_s25, %s32_s25 }
   0xb   :  { %p2888_p3 = scmp.ne.s32.totalorder %s32_s25, %s2887_s10  ;;  %p2893_p5 = scmp.lt.s32.totalorder %s2887_s10, %s2887_s10 }
   0xd   :  { %p2894_p6 = por %p2893_p5, %p2892_p4 }
   0xf   :  { %p2895_p7 = pnand %p2894_p6, %p2888_p3 }
  0x11   :  { %2898 = shalt.err (!%p2895_p7)
}
  0x12   :  { %s3018_s11 = smov 128   ;;  %s3019_s12 = smov 8  }
  0x13   :  { %37 = dma.hbm_to_vmem [thread:$0]  %s3207_s1, 512, %s32_s25, [#allocation6], %s3018_s11, %s3018_s11, %s3019_s12  }
  0x14   :  { %s3020_s15 = smov [#allocation8]   ;;  %s2899_s19 = scalar_lea.hbm %s3209_s3, 8192 }
  0x15   :  { %s53_s16 = sshll.u32 %s3020_s15, 4  ;;  %p2900_p8 = scmp.ne.s32.totalorder %s3209_s3, %s2899_s19  ;;  %s54_s16 = int_to_ptr.vmem [resolvable:$true] %s53_s16 }
  0x16   :  { %p2903_p9 = scmp.lt.u32.totalorder %s2899_s19, %s3209_s3 }
  0x18   :  { %p2905_p10 = pnand %p2903_p9, %p2900_p8 }
  0x1a   :  { %2908 = shalt.err (!%p2905_p10)
}
  0x1b   :  { %s2909_s24 = scalar_lea.vmem %s54_s16, 8192  ;;  %p2914_p12 = scmp.lt.s32.totalorder %s54_s16, %s54_s16 }
  0x1c   :  { %p2910_p11 = scmp.ne.s32.totalorder %s54_s16, %s2909_s24  ;;  %p2915_p13 = scmp.lt.s32.totalorder %s2909_s24, %s2909_s24 }
  0x1e   :  { %p2916_p0 = por %p2915_p13, %p2914_p12 }
  0x20   :  { %p2917_p1 = pnand %p2916_p0, %p2910_p11 }
  0x22   :  { %2920 = shalt.err (!%p2917_p1)
}
  0x23   :  { %s3021_s1 = smov 256   ;;  %s3022_s25 = smov 16  }
  0x24   :  { %59 = dma.hbm_to_vmem [thread:$0]  %s3209_s3, 8192, %s54_s16, [#allocation9], %s3021_s1, %s3021_s1, %s3022_s25  }
  0x25   :  { %s3023_s28 = smov [#allocation2]   ;;  %s3024_s30 = smov [#allocation7]  }
  0x26   :  { %s22_s29 = sshll.u32 %s3023_s28, 4  ;;  %s44_s8 = sshll.u32 %s3024_s30, 4  ;;  %s23_s29 = int_to_ptr.vmem [resolvable:$true] %s22_s29  ;;  %s45_s8 = int_to_ptr.vmem [resolvable:$true] %s44_s8 }
  0x27   :  { %s2921_s11 = scalar_lea.hbm %s3206_s0, 32 }
  0x28   :  { %p2922_p2 = scmp.ne.s32.totalorder %s3206_s0, %s2921_s11  ;;  %p2925_p3 = scmp.lt.u32.totalorder %s2921_s11, %s3206_s0 }
  0x2a   :  { %p2927_p4 = pnand %p2925_p3, %p2922_p2 }
  0x2c   :  { %2930 = shalt.err (!%p2927_p4)
}
  0x2d   :  { %s2931_s3 = scalar_lea.vmem %s23_s29, 32  ;;  %p2936_p6 = scmp.lt.s32.totalorder %s23_s29, %s23_s29 }
  0x2e   :  { %p2932_p5 = scmp.ne.s32.totalorder %s23_s29, %s2931_s3  ;;  %p2937_p7 = scmp.lt.s32.totalorder %s2931_s3, %s2931_s3 }
  0x30   :  { %p2938_p8 = por %p2937_p7, %p2936_p6 }
  0x32   :  { %p2939_p9 = pnand %p2938_p8, %p2932_p5 }
  0x34   :  { %2942 = shalt.err (!%p2939_p9)
}
  0x35   :  { %25 = dma.hbm_to_vmem [thread:$0]  %s3206_s0, 32, %s23_s29, [#allocation3]  }
  0x36   :  { %s2943_s20 = scalar_lea.hbm %s3208_s2, 32 }
  0x37   :  { %p2944_p10 = scmp.ne.s32.totalorder %s3208_s2, %s2943_s20  ;;  %p2947_p11 = scmp.lt.u32.totalorder %s2943_s20, %s3208_s2 }
  0x39   :  { %p2949_p12 = pnand %p2947_p11, %p2944_p10 }
  0x3b   :  { %2952 = shalt.err (!%p2949_p12)
}
  0x3c   :  { %s2953_s1 = scalar_lea.vmem %s45_s8, 32  ;;  %p2958_p0 = scmp.lt.s32.totalorder %s45_s8, %s45_s8 }
  0x3d   :  { %p2954_p13 = scmp.ne.s32.totalorder %s45_s8, %s2953_s1  ;;  %p2959_p1 = scmp.lt.s32.totalorder %s2953_s1, %s2953_s1 }
  0x3f   :  { %p2960_p2 = por %p2959_p1, %p2958_p0 }
  0x41   :  { %p2961_p3 = pnand %p2960_p2, %p2954_p13 }
  0x43   :  { %2964 = shalt.err (!%p2961_p3)
}
  0x44   :  { %47 = dma.hbm_to_vmem [thread:$0]  %s3208_s2, 32, %s45_s8, [#allocation6]  }
  0x45   :  { %s3025_s26 = smov [#allocation10]   ;;  %s2965_s30 = scalar_lea.hbm %s3211_s5, 24576 }
  0x46   :  { %s67_s27 = sshll.u32 %s3025_s26, 4  ;;  %p2966_p4 = scmp.ne.s32.totalorder %s3211_s5, %s2965_s30  ;;  %s68_s27 = int_to_ptr.vmem [resolvable:$true] %s67_s27 }
  0x47   :  { %p2969_p5 = scmp.lt.u32.totalorder %s2965_s30, %s3211_s5 }
  0x49   :  { %p2971_p6 = pnand %p2969_p5, %p2966_p4 }
  0x4b   :  { %2974 = shalt.err (!%p2971_p6)
}
  0x4c   :  { %s2975_s13 = scalar_lea.vmem %s68_s27, 24576  ;;  %p2980_p8 = scmp.lt.s32.totalorder %s68_s27, %s68_s27 }
  0x4d   :  { %p2976_p7 = scmp.ne.s32.totalorder %s68_s27, %s2975_s13  ;;  %p2981_p9 = scmp.lt.s32.totalorder %s2975_s13, %s2975_s13 }
  0x4f   :  { %p2982_p10 = por %p2981_p9, %p2980_p8 }
  0x51   :  { %p2983_p11 = pnand %p2982_p10, %p2976_p7 }
  0x53   :  { %2986 = shalt.err (!%p2983_p11)
}
  0x54   :  { %s3026_s2 = smov 384   ;;  %s3027_s8 = smov 24  }
  0x55   :  { %73 = dma.hbm_to_vmem [thread:$0]  %s3211_s5, 24576, %s68_s27, [#allocation9], %s3026_s2, %s3026_s2, %s3027_s8  }
  0x56   :  { %3009 = dma.done.wait [#allocation3], 32  }
  0x57   :  { %3010 = vsyncadd [#allocation3], 4294967264 }
  0x58   :  { %3011 = dma.done.wait [#allocation6], 544  }
  0x59   :  { %3012 = vsyncadd [#allocation6], 4294966752 }
  0x5a   :  { %3013 = dma.done.wait [#allocation9], 32768  }
  0x5b   :  { %3014 = vsyncadd [#allocation9], 4294934528  ;;  %v3028_v0 = vmov 0   ;;  %v2475_v1 = vld [vmem:[#allocation5 + $0x4] ss:$8 sps:$4 sm:$0xff]   ;;  %vm130_vm0 = vcmask 261120   ;;  %v100_v62 = vlaneseq }
  0x5c   :  { %166 = vmatprep.mubr.bf16.mxu0 %v3028_v0  ;;  %v2477_v2 = vld [vmem:[#allocation5] ss:$8 sps:$4 sm:$0xff]   ;;  %134 = vmatprep.subr.bf16.mxu0 %v2475_v1  ;;  %v2478_v3 = vld [vmem:[#allocation5 + $0x14] ss:$8 sps:$4 sm:$0xff]   ;;  %v2480_v4 = vld [vmem:[#allocation5 + $0x10] ss:$8 sps:$4 sm:$0xff]  }
  0x5d   :  { %135 = vmatpush1.bf16.msra.mxu0 %v2477_v2  ;;  %v92_v5 = vld [vmem:[#allocation2] sm:$0x3]  ;;  %v2483_v6 = vld [vmem:[#allocation8 + $0x4] ss:$16 sps:$4 sm:$0xff]   ;;  %v2481_v8 = vld [vmem:[#allocation8] ss:$16 sps:$4 sm:$0xff]  }
  0x5e   :  { %136 = vmatprep.subr.bf16.mxu0 %v2478_v3  ;;  %v93_v7 = vpack.c.bf16 %v92_v5, %v92_v5  ;;  %v2486_v9 = vld [vmem:[#allocation8 + $0x24] ss:$16 sps:$4 sm:$0xff]   ;;  %v2484_v10 = vld [vmem:[#allocation8 + $0x20] ss:$16 sps:$4 sm:$0xff]   ;;  %v2531_v39 = vld [vmem:[#allocation8 + $0xc] ss:$16 sps:$4 sm:$0xff]  }
  0x5f   :  { %v2489_v11 = vld [vmem:[#allocation8 + $0x44] ss:$16 sps:$4 sm:$0xff]   ;;  %v2487_v12 = vld [vmem:[#allocation8 + $0x40] ss:$16 sps:$4 sm:$0xff]   ;;  %v3131_v1 = vshrl.u32 %v100_v62, 7 }
  0x60   :  { %v2492_v13 = vld [vmem:[#allocation8 + $0x64] ss:$16 sps:$4 sm:$0xff]   ;;  %v2490_v14 = vld [vmem:[#allocation8 + $0x60] ss:$16 sps:$4 sm:$0xff]   ;;  %v98_v5 = vld [vmem:[#allocation7] sm:$0x3] }
  0x61   :  { %137 = vmatpush1.bf16.msra.mxu0 %v2480_v4  ;;  %v2495_v15 = vld [vmem:[#allocation8 + $0x84] ss:$16 sps:$4 sm:$0xff]   ;;  %v2493_v16 = vld [vmem:[#allocation8 + $0x80] ss:$16 sps:$4 sm:$0xff]   ;;  %v3134_v4 = vsub.s32 0, %v3131_v1 }
  0x62   :  { %585 = vmatprep.subr.bf16.mxu0 %v2483_v6  ;;  %v2498_v17 = vld [vmem:[#allocation8 + $0xa4] ss:$16 sps:$4 sm:$0xff]   ;;  %v2496_v18 = vld [vmem:[#allocation8 + $0xa0] ss:$16 sps:$4 sm:$0xff]   ;;  %v3137_v6 = vsub.s32 1, %v3131_v1 }
  0x63   :  { %v2501_v19 = vld [vmem:[#allocation8 + $0xc4] ss:$16 sps:$4 sm:$0xff]   ;;  %v2499_v20 = vld [vmem:[#allocation8 + $0xc0] ss:$16 sps:$4 sm:$0xff]  }
  0x64   :  { %2186 = vmatmul.mubr.msk.bf16.vlgmr.msra.gmra.mrb[0].mxu0 %vm130_vm0, %v93_v7  ;;  %v2504_v21 = vld [vmem:[#allocation8 + $0xe4] ss:$16 sps:$4 sm:$0xff]   ;;  %v2502_v22 = vld [vmem:[#allocation8 + $0xe0] ss:$16 sps:$4 sm:$0xff]  }
  0x65   :  { %586 = vmatpush1.bf16.msra.mxu0 %v2481_v8  ;;  %v2507_v23 = vld [vmem:[#allocation8 + $0x104] ss:$16 sps:$4 sm:$0xff]   ;;  %v2505_v24 = vld [vmem:[#allocation8 + $0x100] ss:$16 sps:$4 sm:$0xff]  }
  0x66   :  { %587 = vmatprep.subr.bf16.mxu0 %v2486_v9  ;;  %v2510_v25 = vld [vmem:[#allocation8 + $0x124] ss:$16 sps:$4 sm:$0xff]   ;;  %v2508_v26 = vld [vmem:[#allocation8 + $0x120] ss:$16 sps:$4 sm:$0xff]   ;;  %v103_v9 = vrot.slane %v98_v5, %v3134_v4 }
  0x67   :  { %v2513_v27 = vld [vmem:[#allocation8 + $0x144] ss:$16 sps:$4 sm:$0xff]   ;;  %v2511_v28 = vld [vmem:[#allocation8 + $0x140] ss:$16 sps:$4 sm:$0xff]  }
  0x68   :  { %v2516_v29 = vld [vmem:[#allocation8 + $0x164] ss:$16 sps:$4 sm:$0xff]   ;;  %v2514_v30 = vld [vmem:[#allocation8 + $0x160] ss:$16 sps:$4 sm:$0xff]  }
  0x69   :  { %588 = vmatpush1.bf16.msra.mxu0 %v2484_v10  ;;  %v2519_v31 = vld [vmem:[#allocation8 + $0x184] ss:$16 sps:$4 sm:$0xff]   ;;  %v2517_v32 = vld [vmem:[#allocation8 + $0x180] ss:$16 sps:$4 sm:$0xff]   ;;  %v107_v10 = vrot.slane %v98_v5, %v3137_v6 }
  0x6a   :  { %589 = vmatprep.subr.bf16.mxu0 %v2489_v11  ;;  %v2522_v33 = vld [vmem:[#allocation8 + $0x1a4] ss:$16 sps:$4 sm:$0xff]   ;;  %v2520_v34 = vld [vmem:[#allocation8 + $0x1a0] ss:$16 sps:$4 sm:$0xff]  }
  0x6b   :  { %v2525_v35 = vld [vmem:[#allocation8 + $0x1c4] ss:$16 sps:$4 sm:$0xff]   ;;  %v2523_v36 = vld [vmem:[#allocation8 + $0x1c0] ss:$16 sps:$4 sm:$0xff]  }
  0x6c   :  { %v2528_v37 = vld [vmem:[#allocation8 + $0x1e4] ss:$16 sps:$4 sm:$0xff]   ;;  %v2526_v38 = vld [vmem:[#allocation8 + $0x1e0] ss:$16 sps:$4 sm:$0xff]  }
  0x6d   :  { %590 = vmatpush1.bf16.msra.mxu0 %v2487_v12  ;;  %v2577_v40 = vld [vmem:[#allocation10 + $0x4] ss:$24 sps:$4 sm:$0xff]   ;;  %v2582_v41 = vld [vmem:[#allocation10] ss:$24 sps:$4 sm:$0xff]   ;;  %v2583_v42 = vld [vmem:[#allocation10 + $0x34] ss:$24 sps:$4 sm:$0xff]  }
  0x6e   :  { %591 = vmatprep.subr.bf16.mxu0 %v2492_v13  ;;  %1859 = vmatprep.subr.bf16.mxu1 %v2577_v40  ;;  %v2588_v43 = vld [vmem:[#allocation10 + $0x30] ss:$24 sps:$4 sm:$0xff]   ;;  %v2589_v44 = vld [vmem:[#allocation10 + $0x64] ss:$24 sps:$4 sm:$0xff]   ;;  %v2594_v45 = vld [vmem:[#allocation10 + $0x60] ss:$24 sps:$4 sm:$0xff]  }
  0x6f   :  { %1860 = vmatpush1.bf16.msra.mxu1 %v2582_v41  ;;  %v2595_v46 = vld [vmem:[#allocation10 + $0x94] ss:$24 sps:$4 sm:$0xff]   ;;  %v2600_v47 = vld [vmem:[#allocation10 + $0x90] ss:$24 sps:$4 sm:$0xff]   ;;  %v2601_v48 = vld [vmem:[#allocation10 + $0xc4] ss:$24 sps:$4 sm:$0xff]  }
  0x70   :  { %1861 = vmatprep.subr.bf16.mxu1 %v2583_v42  ;;  %v2606_v49 = vld [vmem:[#allocation10 + $0xc0] ss:$24 sps:$4 sm:$0xff]   ;;  %v2607_v50 = vld [vmem:[#allocation10 + $0xf4] ss:$24 sps:$4 sm:$0xff]   ;;  %v2612_v51 = vld [vmem:[#allocation10 + $0xf0] ss:$24 sps:$4 sm:$0xff]  }
  0x71   :  { %592 = vmatpush1.bf16.msra.mxu0 %v2490_v14  ;;  %v2613_v52 = vld [vmem:[#allocation10 + $0x124] ss:$24 sps:$4 sm:$0xff]   ;;  %v2618_v53 = vld [vmem:[#allocation10 + $0x120] ss:$24 sps:$4 sm:$0xff]   ;;  %v2619_v54 = vld [vmem:[#allocation10 + $0x154] ss:$24 sps:$4 sm:$0xff]  }
  0x72   :  { %593 = vmatprep.subr.bf16.mxu0 %v2495_v15  ;;  %v2624_v55 = vld [vmem:[#allocation10 + $0x150] ss:$24 sps:$4 sm:$0xff]   ;;  %v2625_v56 = vld [vmem:[#allocation10 + $0x184] ss:$24 sps:$4 sm:$0xff]   ;;  %v2630_v57 = vld [vmem:[#allocation10 + $0x180] ss:$24 sps:$4 sm:$0xff]  }
  0x73   :  { %1862 = vmatpush1.bf16.msra.mxu1 %v2588_v43  ;;  %v2631_v58 = vld [vmem:[#allocation10 + $0x1b4] ss:$24 sps:$4 sm:$0xff]   ;;  %v2636_v59 = vld [vmem:[#allocation10 + $0x1b0] ss:$24 sps:$4 sm:$0xff]   ;;  %v2637_v60 = vld [vmem:[#allocation10 + $0x1e4] ss:$24 sps:$4 sm:$0xff]  }
  0x74   :  { %1863 = vmatprep.subr.bf16.mxu1 %v2589_v44  ;;  %v2642_v61 = vld [vmem:[#allocation10 + $0x1e0] ss:$24 sps:$4 sm:$0xff]   ;;  %v2643_v63 = vld [vmem:[#allocation10 + $0x214] ss:$24 sps:$4 sm:$0xff]   ;;  %v2648_v0 = vld [vmem:[#allocation10 + $0x210] ss:$24 sps:$4 sm:$0xff]  }
  0x75   :  { %594 = vmatpush1.bf16.msra.mxu0 %v2493_v16  ;;  %v2649_v2 = vld [vmem:[#allocation10 + $0x244] ss:$24 sps:$4 sm:$0xff]   ;;  %v2654_v3 = vld [vmem:[#allocation10 + $0x240] ss:$24 sps:$4 sm:$0xff]   ;;  %v2655_v7 = vld [vmem:[#allocation10 + $0x274] ss:$24 sps:$4 sm:$0xff]  }
  0x76   :  { %595 = vmatprep.subr.bf16.mxu0 %v2498_v17  ;;  %v2660_v8 = vld [vmem:[#allocation10 + $0x270] ss:$24 sps:$4 sm:$0xff]   ;;  %v2561_v40 = vld [vmem:[#allocation8 + $0x14c] ss:$16 sps:$4 sm:$0xff]  }
  0x77   :  { %1864 = vmatpush1.bf16.msra.mxu1 %v2594_v45  ;;  %v2559_v41 = vld [vmem:[#allocation8 + $0x148] ss:$16 sps:$4 sm:$0xff]   ;;  %v2564_v42 = vld [vmem:[#allocation8 + $0x16c] ss:$16 sps:$4 sm:$0xff]  }
  0x78   :  { %1865 = vmatprep.subr.bf16.mxu1 %v2595_v46  ;;  %v2562_v43 = vld [vmem:[#allocation8 + $0x168] ss:$16 sps:$4 sm:$0xff]   ;;  %v2567_v44 = vld [vmem:[#allocation8 + $0x18c] ss:$16 sps:$4 sm:$0xff]  }
  0x79   :  { %596 = vmatpush1.bf16.msra.mxu0 %v2496_v18  ;;  %v2565_v45 = vld [vmem:[#allocation8 + $0x188] ss:$16 sps:$4 sm:$0xff]   ;;  %v2570_v46 = vld [vmem:[#allocation8 + $0x1ac] ss:$16 sps:$4 sm:$0xff]  }
  0x7a   :  { %597 = vmatprep.subr.bf16.mxu0 %v2501_v19  ;;  %v2611_v62 = vld [vmem:[#allocation10 + $0xfc] ss:$24 sps:$4 sm:$0xff]   ;;  %v2615_v5 = vld [vmem:[#allocation10 + $0x128] ss:$24 sps:$4 sm:$0xff]  }
  0x7b   :  { %1866 = vmatpush1.bf16.msra.mxu1 %v2600_v47  ;;  %v2568_v47 = vld [vmem:[#allocation8 + $0x1a8] ss:$16 sps:$4 sm:$0xff]  }
  0x7c   :  { %1867 = vmatprep.subr.bf16.mxu1 %v2601_v48  ;;  %v2573_v48 = vld [vmem:[#allocation8 + $0x1cc] ss:$16 sps:$4 sm:$0xff]  }
  0x7d   :  { %598 = vmatpush1.bf16.msra.mxu0 %v2499_v20  ;;  %v2529_v20 = vld [vmem:[#allocation8 + $0x8] ss:$16 sps:$4 sm:$0xff]  }
  0x7e   :  { %599 = vmatprep.subr.bf16.mxu0 %v2504_v21 }
  0x7f   :  { %1868 = vmatpush1.bf16.msra.mxu1 %v2606_v49  ;;  %v2571_v49 = vld [vmem:[#allocation8 + $0x1c8] ss:$16 sps:$4 sm:$0xff]  }
  0x80   :  { %1869 = vmatprep.subr.bf16.mxu1 %v2607_v50  ;;  %v2576_v50 = vld [vmem:[#allocation8 + $0x1ec] ss:$16 sps:$4 sm:$0xff]  }
  0x81   :  { %600 = vmatpush1.bf16.msra.mxu0 %v2502_v22  ;;  %v2534_v22 = vld [vmem:[#allocation8 + $0x2c] ss:$16 sps:$4 sm:$0xff]  }
  0x82   :  { %601 = vmatprep.subr.bf16.mxu0 %v2507_v23  ;;  %v2532_v23 = vld [vmem:[#allocation8 + $0x28] ss:$16 sps:$4 sm:$0xff]  }
  0x83   :  { %1870 = vmatpush1.bf16.msra.mxu1 %v2612_v51  ;;  %v2574_v51 = vld [vmem:[#allocation8 + $0x1e8] ss:$16 sps:$4 sm:$0xff]  }
  0x84   :  { %1871 = vmatprep.subr.bf16.mxu1 %v2613_v52  ;;  %v2581_v52 = vld [vmem:[#allocation10 + $0xc] ss:$24 sps:$4 sm:$0xff]  }
  0x85   :  { %602 = vmatpush1.bf16.msra.mxu0 %v2505_v24  ;;  %v2537_v24 = vld [vmem:[#allocation8 + $0x4c] ss:$16 sps:$4 sm:$0xff]  }
  0x86   :  { %603 = vmatprep.subr.bf16.mxu0 %v2510_v25  ;;  %v2535_v25 = vld [vmem:[#allocation8 + $0x48] ss:$16 sps:$4 sm:$0xff]  }
  0x87   :  { %1872 = vmatpush1.bf16.msra.mxu1 %v2618_v53  ;;  %v2579_v53 = vld [vmem:[#allocation10 + $0x8] ss:$24 sps:$4 sm:$0xff]  }
  0x88   :  { %1873 = vmatprep.subr.bf16.mxu1 %v2619_v54  ;;  %v2587_v54 = vld [vmem:[#allocation10 + $0x3c] ss:$24 sps:$4 sm:$0xff]  }
  0x89   :  { %604 = vmatpush1.bf16.msra.mxu0 %v2508_v26  ;;  %v2540_v26 = vld [vmem:[#allocation8 + $0x6c] ss:$16 sps:$4 sm:$0xff]  }
  0x8a   :  { %605 = vmatprep.subr.bf16.mxu0 %v2513_v27  ;;  %v2538_v27 = vld [vmem:[#allocation8 + $0x68] ss:$16 sps:$4 sm:$0xff]  }
  0x8b   :  { %1874 = vmatpush1.bf16.msra.mxu1 %v2624_v55  ;;  %v2585_v55 = vld [vmem:[#allocation10 + $0x38] ss:$24 sps:$4 sm:$0xff]  }
  0x8c   :  { %1875 = vmatprep.subr.bf16.mxu1 %v2625_v56  ;;  %v2593_v56 = vld [vmem:[#allocation10 + $0x6c] ss:$24 sps:$4 sm:$0xff]  }
  0x8d   :  { %606 = vmatpush1.bf16.msra.mxu0 %v2511_v28  ;;  %v2543_v28 = vld [vmem:[#allocation8 + $0x8c] ss:$16 sps:$4 sm:$0xff]  }
  0x8e   :  { %607 = vmatprep.subr.bf16.mxu0 %v2516_v29  ;;  %v2541_v29 = vld [vmem:[#allocation8 + $0x88] ss:$16 sps:$4 sm:$0xff]  }
  0x8f   :  { %1876 = vmatpush1.bf16.msra.mxu1 %v2630_v57  ;;  %v2591_v57 = vld [vmem:[#allocation10 + $0x68] ss:$24 sps:$4 sm:$0xff]  }
  0x90   :  { %1877 = vmatprep.subr.bf16.mxu1 %v2631_v58  ;;  %v2599_v58 = vld [vmem:[#allocation10 + $0x9c] ss:$24 sps:$4 sm:$0xff]  }
  0x91   :  { %608 = vmatpush1.bf16.msra.mxu0 %v2514_v30  ;;  %v2546_v30 = vld [vmem:[#allocation8 + $0xac] ss:$16 sps:$4 sm:$0xff]  }
  0x92   :  { %609 = vmatprep.subr.bf16.mxu0 %v2519_v31  ;;  %v2544_v31 = vld [vmem:[#allocation8 + $0xa8] ss:$16 sps:$4 sm:$0xff]  }
  0x93   :  { %1878 = vmatpush1.bf16.msra.mxu1 %v2636_v59  ;;  %v2597_v59 = vld [vmem:[#allocation10 + $0x98] ss:$24 sps:$4 sm:$0xff]  }
  0x94   :  { %1879 = vmatprep.subr.bf16.mxu1 %v2637_v60  ;;  %v2605_v60 = vld [vmem:[#allocation10 + $0xcc] ss:$24 sps:$4 sm:$0xff]  }
  0x95   :  { %610 = vmatpush1.bf16.msra.mxu0 %v2517_v32  ;;  %v2549_v32 = vld [vmem:[#allocation8 + $0xcc] ss:$16 sps:$4 sm:$0xff]  }
  0x96   :  { %611 = vmatprep.subr.bf16.mxu0 %v2522_v33  ;;  %v2547_v33 = vld [vmem:[#allocation8 + $0xc8] ss:$16 sps:$4 sm:$0xff]  }
  0x97   :  { %1880 = vmatpush1.bf16.msra.mxu1 %v2642_v61  ;;  %v2603_v61 = vld [vmem:[#allocation10 + $0xc8] ss:$24 sps:$4 sm:$0xff]  }
  0x98   :  { %1881 = vmatprep.subr.bf16.mxu1 %v2643_v63  ;;  %v2609_v63 = vld [vmem:[#allocation10 + $0xf8] ss:$24 sps:$4 sm:$0xff]  }
  0x99   :  { %612 = vmatpush1.bf16.msra.mxu0 %v2520_v34  ;;  %v2552_v34 = vld [vmem:[#allocation8 + $0xec] ss:$16 sps:$4 sm:$0xff]  }
  0x9a   :  { %613 = vmatprep.subr.bf16.mxu0 %v2525_v35  ;;  %v2550_v35 = vld [vmem:[#allocation8 + $0xe8] ss:$16 sps:$4 sm:$0xff]  }
  0x9b   :  { %1882 = vmatpush1.bf16.msra.mxu1 %v2648_v0  ;;  %v2617_v0 = vld [vmem:[#allocation10 + $0x12c] ss:$24 sps:$4 sm:$0xff]  }
  0x9c   :  { %1883 = vmatprep.subr.bf16.mxu1 %v2649_v2  ;;  %v2661_v2 = vld [vmem:[#allocation10 + $0x2a4] ss:$24 sps:$4 sm:$0xff]  }
  0x9d   :  { %614 = vmatpush1.bf16.msra.mxu0 %v2523_v36  ;;  %v2555_v36 = vld [vmem:[#allocation8 + $0x10c] ss:$16 sps:$4 sm:$0xff]  }
  0x9e   :  { %615 = vmatprep.subr.bf16.mxu0 %v2528_v37  ;;  %v2553_v37 = vld [vmem:[#allocation8 + $0x108] ss:$16 sps:$4 sm:$0xff]  }
  0x9f   :  { %1884 = vmatpush1.bf16.msra.mxu1 %v2654_v3  ;;  %v2666_v3 = vld [vmem:[#allocation10 + $0x2a0] ss:$24 sps:$4 sm:$0xff]  }
  0xa0   :  { %1885 = vmatprep.subr.bf16.mxu1 %v2655_v7  ;;  %v2623_v7 = vld [vmem:[#allocation10 + $0x15c] ss:$24 sps:$4 sm:$0xff]  }
  0xa1   :  { %616 = vmatpush1.bf16.msra.mxu0 %v2526_v38  ;;  %v2558_v38 = vld [vmem:[#allocation8 + $0x12c] ss:$16 sps:$4 sm:$0xff]  }
  0xa2   :  { %626 = vmatprep.subr.bf16.mxu0 %v2531_v39  ;;  %v2556_v39 = vld [vmem:[#allocation8 + $0x128] ss:$16 sps:$4 sm:$0xff]  }
  0xa3   :  { %1886 = vmatpush1.bf16.msra.mxu1 %v2660_v8  ;;  %v2667_v8 = vld [vmem:[#allocation10 + $0x2d4] ss:$24 sps:$4 sm:$0xff]  }
  0xa4   :  { %1887 = vmatprep.subr.bf16.mxu1 %v2661_v2  ;;  %v2714_v2 = vld [vmem:[#allocation10 + $0x42c] ss:$24 sps:$4 sm:$0xff]  }
  0xa7   :  { %1888 = vmatpush1.bf16.msra.mxu1 %v2666_v3  ;;  %v2709_v3 = vld [vmem:[#allocation10 + $0x420] ss:$24 sps:$4 sm:$0xff]  }
  0xa8   :  { %1889 = vmatprep.subr.bf16.mxu1 %v2667_v8  ;;  %v2720_v8 = vld [vmem:[#allocation10 + $0x45c] ss:$24 sps:$4 sm:$0xff]  }
 0x137   :  { %v168_v11 = vpop.f32.mrb[0].mxu0 }
 0x138   :  { %v169_v12 = vadd.f32 %v168_v11, %v103_v9  ;;  %v170_v13 = vpop.f32.mrb[1].mxu0  ;;  %v2672_v9 = vld [vmem:[#allocation10 + $0x2d0] ss:$24 sps:$4 sm:$0xff]   ;;  %v2629_v11 = vld [vmem:[#allocation10 + $0x18c] ss:$24 sps:$4 sm:$0xff]  }
 0x139   :  { %v171_v14 = vadd.f32 %v170_v13, %v107_v10  ;;  %v172_v15 = vpop.f32.mrb[2].mxu0  ;;  %v2621_v10 = vld [vmem:[#allocation10 + $0x158] ss:$24 sps:$4 sm:$0xff]   ;;  %1890 = vmatpush1.bf16.msra.mxu1 %v2672_v9  ;;  %v2627_v13 = vld [vmem:[#allocation10 + $0x188] ss:$24 sps:$4 sm:$0xff]  }
 0x13a   :  { %v175_v16 = vmax.f32 %v169_v12, 0.0  ;;  %v173_v17 = vpop.f32.mrb[3].mxu0  ;;  %v2675_v12 = vld [vmem:[#allocation10 + $0x304] ss:$24 sps:$4 sm:$0xff]   ;;  %v2633_v15 = vld [vmem:[#allocation10 + $0x1b8] ss:$24 sps:$4 sm:$0xff]  }
 0x13b   :  { %v176_v18 = vmax.f32 %v171_v14, 0.0  ;;  %1900 = vmatprep.subr.bf16.mxu1 %v2675_v12  ;;  %v2635_v14 = vld [vmem:[#allocation10 + $0x1bc] ss:$24 sps:$4 sm:$0xff]   ;;  %v2639_v17 = vld [vmem:[#allocation10 + $0x1e8] ss:$24 sps:$4 sm:$0xff]  }
 0x13c   :  { %v3141_v21 = vpack.c.bf16 %v175_v16, %v175_v16  ;;  %v2641_v16 = vld [vmem:[#allocation10 + $0x1ec] ss:$24 sps:$4 sm:$0xff]   ;;  %v2715_v9 = vld [vmem:[#allocation10 + $0x450] ss:$24 sps:$4 sm:$0xff]  }
 0x13d   :  { %v178_v19 = vpack.c.bf16 %v176_v18, %v176_v18  ;;  %v2647_v18 = vld [vmem:[#allocation10 + $0x21c] ss:$24 sps:$4 sm:$0xff]   ;;  %v2726_v12 = vld [vmem:[#allocation10 + $0x48c] ss:$24 sps:$4 sm:$0xff]  }
 0x13f   :  { %617 = vmatprep.mubr.bf16.mxu0 %v178_v19 }
 0x140   :  { %618 = vmatmul.mubr.bf16.vlgmr.msra.gmra.mrb[4].mxu0 %v3141_v21 }
 0x141   :  { %627 = vmatpush1.bf16.msra.mxu0 %v2529_v20  ;;  %658 = vmatprep.mubr.bf16.mxu0 %v178_v19  ;;  %v2645_v19 = vld [vmem:[#allocation10 + $0x218] ss:$24 sps:$4 sm:$0xff]   ;;  %v2653_v20 = vld [vmem:[#allocation10 + $0x24c] ss:$24 sps:$4 sm:$0xff]  }
 0x142   :  { %628 = vmatprep.subr.bf16.mxu0 %v2534_v22  ;;  %v2659_v22 = vld [vmem:[#allocation10 + $0x27c] ss:$24 sps:$4 sm:$0xff]  }
 0x145   :  { %629 = vmatpush1.bf16.msra.mxu0 %v2532_v23  ;;  %v2657_v23 = vld [vmem:[#allocation10 + $0x278] ss:$24 sps:$4 sm:$0xff]  }
 0x146   :  { %630 = vmatprep.subr.bf16.mxu0 %v2537_v24  ;;  %v2665_v24 = vld [vmem:[#allocation10 + $0x2ac] ss:$24 sps:$4 sm:$0xff]  }
 0x149   :  { %631 = vmatpush1.bf16.msra.mxu0 %v2535_v25  ;;  %v2663_v25 = vld [vmem:[#allocation10 + $0x2a8] ss:$24 sps:$4 sm:$0xff]  }
 0x14a   :  { %632 = vmatprep.subr.bf16.mxu0 %v2540_v26  ;;  %v2671_v26 = vld [vmem:[#allocation10 + $0x2dc] ss:$24 sps:$4 sm:$0xff]  }
 0x14d   :  { %633 = vmatpush1.bf16.msra.mxu0 %v2538_v27  ;;  %v2669_v27 = vld [vmem:[#allocation10 + $0x2d8] ss:$24 sps:$4 sm:$0xff]  }
 0x14e   :  { %634 = vmatprep.subr.bf16.mxu0 %v2543_v28  ;;  %v2678_v28 = vld [vmem:[#allocation10 + $0x30c] ss:$24 sps:$4 sm:$0xff]  }
 0x151   :  { %635 = vmatpush1.bf16.msra.mxu0 %v2541_v29  ;;  %v3148_v29 = vld [vmem:[%s3210_s4] sm:$0xf] }
 0x152   :  { %636 = vmatprep.subr.bf16.mxu0 %v2546_v30  ;;  %v248_v30 = vrot.slane %v3148_v29, %v3134_v4 }
 0x155   :  { %637 = vmatpush1.bf16.msra.mxu0 %v2544_v31  ;;  %v252_v31 = vrot.slane %v3148_v29, %v3137_v6 }
 0x156   :  { %638 = vmatprep.subr.bf16.mxu0 %v2549_v32 }
 0x159   :  { %639 = vmatpush1.bf16.msra.mxu0 %v2547_v33 }
 0x15a   :  { %640 = vmatprep.subr.bf16.mxu0 %v2552_v34 }
 0x15d   :  { %641 = vmatpush1.bf16.msra.mxu0 %v2550_v35 }
 0x15e   :  { %642 = vmatprep.subr.bf16.mxu0 %v2555_v36 }
 0x161   :  { %643 = vmatpush1.bf16.msra.mxu0 %v2553_v37 }
 0x162   :  { %644 = vmatprep.subr.bf16.mxu0 %v2558_v38 }
 0x165   :  { %645 = vmatpush1.bf16.msra.mxu0 %v2556_v39 }
 0x166   :  { %646 = vmatprep.subr.bf16.mxu0 %v2561_v40 }
 0x169   :  { %647 = vmatpush1.bf16.msra.mxu0 %v2559_v41  ;;  %v2673_v41 = vld [vmem:[#allocation10 + $0x300] ss:$24 sps:$4 sm:$0xff]  }
 0x16a   :  { %648 = vmatprep.subr.bf16.mxu0 %v2564_v42  ;;  %v2676_v42 = vld [vmem:[#allocation10 + $0x308] ss:$24 sps:$4 sm:$0xff]  }
 0x16d   :  { %649 = vmatpush1.bf16.msra.mxu0 %v2562_v43 }
 0x16e   :  { %650 = vmatprep.subr.bf16.mxu0 %v2567_v44  ;;  %v2681_v44 = vld [vmem:[#allocation10 + $0x334] ss:$24 sps:$4 sm:$0xff]  }
 0x171   :  { %651 = vmatpush1.bf16.msra.mxu0 %v2565_v45  ;;  %v2684_v45 = vld [vmem:[#allocation10 + $0x33c] ss:$24 sps:$4 sm:$0xff]  }
 0x172   :  { %652 = vmatprep.subr.bf16.mxu0 %v2570_v46  ;;  %v2679_v46 = vld [vmem:[#allocation10 + $0x330] ss:$24 sps:$4 sm:$0xff]  }
 0x175   :  { %653 = vmatpush1.bf16.msra.mxu0 %v2568_v47  ;;  %v2682_v47 = vld [vmem:[#allocation10 + $0x338] ss:$24 sps:$4 sm:$0xff]  }
 0x176   :  { %654 = vmatprep.subr.bf16.mxu0 %v2573_v48  ;;  %v2687_v48 = vld [vmem:[#allocation10 + $0x364] ss:$24 sps:$4 sm:$0xff]  }
 0x179   :  { %655 = vmatpush1.bf16.msra.mxu0 %v2571_v49  ;;  %v2690_v49 = vld [vmem:[#allocation10 + $0x36c] ss:$24 sps:$4 sm:$0xff]  }
 0x17a   :  { %656 = vmatprep.subr.bf16.mxu0 %v2576_v50  ;;  %v2685_v50 = vld [vmem:[#allocation10 + $0x360] ss:$24 sps:$4 sm:$0xff]  }
 0x17d   :  { %657 = vmatpush1.bf16.msra.mxu0 %v2574_v51  ;;  %v2688_v51 = vld [vmem:[#allocation10 + $0x368] ss:$24 sps:$4 sm:$0xff]  }
 0x17e   :  { %1941 = vmatprep.subr.bf16.mxu0 %v2581_v52  ;;  %v2693_v52 = vld [vmem:[#allocation10 + $0x394] ss:$24 sps:$4 sm:$0xff]  }
 0x180   :  { %659 = vmatmul.mubr.bf16.vlgmr.msra.gmra.mrb[8].mxu0 %v3141_v21  ;;  %v2651_v21 = vld [vmem:[#allocation10 + $0x248] ss:$24 sps:$4 sm:$0xff]  }
 0x181   :  { %1942 = vmatpush1.bf16.msra.mxu0 %v2579_v53  ;;  %v2696_v53 = vld [vmem:[#allocation10 + $0x39c] ss:$24 sps:$4 sm:$0xff]  }
 0x182   :  { %1943 = vmatprep.subr.bf16.mxu0 %v2587_v54  ;;  %v2691_v54 = vld [vmem:[#allocation10 + $0x390] ss:$24 sps:$4 sm:$0xff]  }
 0x185   :  { %1944 = vmatpush1.bf16.msra.mxu0 %v2585_v55  ;;  %v2694_v55 = vld [vmem:[#allocation10 + $0x398] ss:$24 sps:$4 sm:$0xff]  }
 0x186   :  { %1945 = vmatprep.subr.bf16.mxu0 %v2593_v56  ;;  %v2699_v56 = vld [vmem:[#allocation10 + $0x3c4] ss:$24 sps:$4 sm:$0xff]  }
 0x189   :  { %1946 = vmatpush1.bf16.msra.mxu0 %v2591_v57  ;;  %v2702_v57 = vld [vmem:[#allocation10 + $0x3cc] ss:$24 sps:$4 sm:$0xff]  }
 0x18a   :  { %1947 = vmatprep.subr.bf16.mxu0 %v2599_v58  ;;  %v2697_v58 = vld [vmem:[#allocation10 + $0x3c0] ss:$24 sps:$4 sm:$0xff]  }
 0x18d   :  { %1948 = vmatpush1.bf16.msra.mxu0 %v2597_v59  ;;  %v2700_v59 = vld [vmem:[#allocation10 + $0x3c8] ss:$24 sps:$4 sm:$0xff]  }
 0x18e   :  { %1949 = vmatprep.subr.bf16.mxu0 %v2605_v60  ;;  %v2705_v60 = vld [vmem:[#allocation10 + $0x3f4] ss:$24 sps:$4 sm:$0xff]  }
 0x191   :  { %1950 = vmatpush1.bf16.msra.mxu0 %v2603_v61  ;;  %v2708_v61 = vld [vmem:[#allocation10 + $0x3fc] ss:$24 sps:$4 sm:$0xff]  }
 0x192   :  { %1951 = vmatprep.subr.bf16.mxu0 %v2611_v62  ;;  %v2703_v62 = vld [vmem:[#allocation10 + $0x3f0] ss:$24 sps:$4 sm:$0xff]  }
 0x195   :  { %1952 = vmatpush1.bf16.msra.mxu0 %v2609_v63  ;;  %v2706_v63 = vld [vmem:[#allocation10 + $0x3f8] ss:$24 sps:$4 sm:$0xff]  }
 0x196   :  { %1953 = vmatprep.subr.bf16.mxu0 %v2617_v0  ;;  %v2711_v0 = vld [vmem:[#allocation10 + $0x424] ss:$24 sps:$4 sm:$0xff]  }
 0x199   :  { %1954 = vmatpush1.bf16.msra.mxu0 %v2615_v5  ;;  %v2712_v5 = vld [vmem:[#allocation10 + $0x428] ss:$24 sps:$4 sm:$0xff]  }
 0x19a   :  { %1955 = vmatprep.subr.bf16.mxu0 %v2623_v7  ;;  %v2717_v7 = vld [vmem:[#allocation10 + $0x454] ss:$24 sps:$4 sm:$0xff]  }
 0x19d   :  { %1956 = vmatpush1.bf16.msra.mxu0 %v2621_v10  ;;  %v2718_v10 = vld [vmem:[#allocation10 + $0x458] ss:$24 sps:$4 sm:$0xff]  }
 0x19e   :  { %1957 = vmatprep.subr.bf16.mxu0 %v2629_v11  ;;  %v2723_v11 = vld [vmem:[#allocation10 + $0x484] ss:$24 sps:$4 sm:$0xff]  }
 0x1a1   :  { %1958 = vmatpush1.bf16.msra.mxu0 %v2627_v13  ;;  %v2721_v13 = vld [vmem:[#allocation10 + $0x480] ss:$24 sps:$4 sm:$0xff]  }
 0x1a2   :  { %1959 = vmatprep.subr.bf16.mxu0 %v2635_v14  ;;  %v2724_v14 = vld [vmem:[#allocation10 + $0x488] ss:$24 sps:$4 sm:$0xff]  }
 0x1a5   :  { %1960 = vmatpush1.bf16.msra.mxu0 %v2633_v15  ;;  %v2729_v15 = vld [vmem:[#allocation10 + $0x4b4] ss:$24 sps:$4 sm:$0xff]  }
 0x1a6   :  { %1961 = vmatprep.subr.bf16.mxu0 %v2641_v16  ;;  %v2732_v16 = vld [vmem:[#allocation10 + $0x4bc] ss:$24 sps:$4 sm:$0xff]  }
 0x1a9   :  { %1962 = vmatpush1.bf16.msra.mxu0 %v2639_v17  ;;  %v2727_v17 = vld [vmem:[#allocation10 + $0x4b0] ss:$24 sps:$4 sm:$0xff]  }
 0x1aa   :  { %1963 = vmatprep.subr.bf16.mxu0 %v2647_v18  ;;  %v2730_v18 = vld [vmem:[#allocation10 + $0x4b8] ss:$24 sps:$4 sm:$0xff]  }
 0x1ad   :  { %1964 = vmatpush1.bf16.msra.mxu0 %v2645_v19  ;;  %v2735_v19 = vld [vmem:[#allocation10 + $0x4e4] ss:$24 sps:$4 sm:$0xff]  }
 0x1ae   :  { %1965 = vmatprep.subr.bf16.mxu0 %v2653_v20  ;;  %v2738_v20 = vld [vmem:[#allocation10 + $0x4ec] ss:$24 sps:$4 sm:$0xff]  }
 0x1b1   :  { %1966 = vmatpush1.bf16.msra.mxu0 %v2651_v21  ;;  %v2733_v21 = vld [vmem:[#allocation10 + $0x4e0] ss:$24 sps:$4 sm:$0xff]  }
 0x1b2   :  { %1967 = vmatprep.subr.bf16.mxu0 %v2659_v22  ;;  %v2736_v22 = vld [vmem:[#allocation10 + $0x4e8] ss:$24 sps:$4 sm:$0xff]  }
 0x1b5   :  { %1968 = vmatpush1.bf16.msra.mxu0 %v2657_v23  ;;  %v2741_v23 = vld [vmem:[#allocation10 + $0x514] ss:$24 sps:$4 sm:$0xff]  }
 0x1b6   :  { %1969 = vmatprep.subr.bf16.mxu0 %v2665_v24  ;;  %v2744_v24 = vld [vmem:[#allocation10 + $0x51c] ss:$24 sps:$4 sm:$0xff]  }
 0x1b9   :  { %1970 = vmatpush1.bf16.msra.mxu0 %v2663_v25  ;;  %v2739_v25 = vld [vmem:[#allocation10 + $0x510] ss:$24 sps:$4 sm:$0xff]  }
 0x1ba   :  { %1971 = vmatprep.subr.bf16.mxu0 %v2671_v26  ;;  %v2742_v26 = vld [vmem:[#allocation10 + $0x518] ss:$24 sps:$4 sm:$0xff]  }
 0x1bd   :  { %1972 = vmatpush1.bf16.msra.mxu0 %v2669_v27  ;;  %v2747_v27 = vld [vmem:[#allocation10 + $0x544] ss:$24 sps:$4 sm:$0xff]  }
 0x1be   :  { %1982 = vmatprep.subr.bf16.mxu0 %v2678_v28  ;;  %v2750_v28 = vld [vmem:[#allocation10 + $0x54c] ss:$24 sps:$4 sm:$0xff]  }
 0x213   :  { %v619_v32 = vpop.f32.mrb[4].mxu0 }
 0x214   :  { %v620_v33 = vadd.f32 %v619_v32, %v248_v30  ;;  %v621_v34 = vpop.f32.mrb[5].mxu0  ;;  %v2745_v30 = vld [vmem:[#allocation10 + $0x540] ss:$24 sps:$4 sm:$0xff]   ;;  %v2753_v32 = vld [vmem:[#allocation10 + $0x574] ss:$24 sps:$4 sm:$0xff]  }
 0x215   :  { %v622_v35 = vadd.f32 %v621_v34, %v252_v31  ;;  %v623_v36 = vpop.f32.mrb[6].mxu0  ;;  %v2748_v31 = vld [vmem:[#allocation10 + $0x548] ss:$24 sps:$4 sm:$0xff]   ;;  %v255_v34 = vsub.s32 2, %v3131_v1 }
 0x216   :  { %v667_v37 = vmax.f32 %v620_v33, 0.0  ;;  %v624_v38 = vpop.f32.mrb[7].mxu0  ;;  %v2756_v33 = vld [vmem:[#allocation10 + $0x57c] ss:$24 sps:$4 sm:$0xff]   ;;  %v2754_v36 = vld [vmem:[#allocation10 + $0x578] ss:$24 sps:$4 sm:$0xff]  }
 0x217   :  { %v668_v39 = vmax.f32 %v622_v35, 0.0  ;;  %v2751_v35 = vld [vmem:[#allocation10 + $0x570] ss:$24 sps:$4 sm:$0xff]   ;;  %v2759_v38 = vld [vmem:[#allocation10 + $0x5a4] ss:$24 sps:$4 sm:$0xff]  }
 0x218   :  { %v3156_v43 = vpack.c.bf16 %v667_v37, %v667_v37  ;;  %v259_v37 = vsub.s32 3, %v3131_v1 }
 0x219   :  { %v3154_v40 = vpack.c.bf16 %v668_v39, %v668_v39  ;;  %v2762_v39 = vld [vmem:[#allocation10 + $0x5ac] ss:$24 sps:$4 sm:$0xff]  }
 0x21b   :  { %1891 = vmatprep.mubr.bf16.mxu1 %v3154_v40  ;;  %1973 = vmatprep.mubr.bf16.mxu0 %v3154_v40 }
 0x21c   :  { %1892 = vmatmul.mubr.bf16.vlgmr.msra.gmra.mrb[0].mxu1 %v3156_v43  ;;  %1974 = vmatmul.mubr.bf16.vlgmr.msra.gmra.mrb[12].mxu0 %v3156_v43 }
 0x21d   :  { %1901 = vmatpush1.bf16.msra.mxu1 %v2673_v41  ;;  %1983 = vmatpush1.bf16.msra.mxu0 %v2676_v42  ;;  %v256_v41 = vrot.slane %v3148_v29, %v255_v34  ;;  %v260_v42 = vrot.slane %v3148_v29, %v259_v37  ;;  %v2771_v29 = vld [vmem:[#allocation10 + $0x14] ss:$24 sps:$4 sm:$0xff]  }
 0x21e   :  { %1902 = vmatprep.subr.bf16.mxu1 %v2681_v44  ;;  %1984 = vmatprep.subr.bf16.mxu0 %v2684_v45  ;;  %v2757_v44 = vld [vmem:[#allocation10 + $0x5a0] ss:$24 sps:$4 sm:$0xff]  }
 0x21f   :  { %v2760_v45 = vld [vmem:[#allocation10 + $0x5a8] ss:$24 sps:$4 sm:$0xff]  }
 0x221   :  { %1903 = vmatpush1.bf16.msra.mxu1 %v2679_v46  ;;  %1985 = vmatpush1.bf16.msra.mxu0 %v2682_v47  ;;  %v2765_v46 = vld [vmem:[#allocation10 + $0x5d4] ss:$24 sps:$4 sm:$0xff]  }
 0x222   :  { %1904 = vmatprep.subr.bf16.mxu1 %v2687_v48  ;;  %1986 = vmatprep.subr.bf16.mxu0 %v2690_v49  ;;  %v2768_v47 = vld [vmem:[#allocation10 + $0x5dc] ss:$24 sps:$4 sm:$0xff]  }
 0x225   :  { %1905 = vmatpush1.bf16.msra.mxu1 %v2685_v50  ;;  %1987 = vmatpush1.bf16.msra.mxu0 %v2688_v51 }
 0x226   :  { %1906 = vmatprep.subr.bf16.mxu1 %v2693_v52  ;;  %1988 = vmatprep.subr.bf16.mxu0 %v2696_v53  ;;  %v2763_v53 = vld [vmem:[#allocation10 + $0x5d0] ss:$24 sps:$4 sm:$0xff]  }
 0x229   :  { %1907 = vmatpush1.bf16.msra.mxu1 %v2691_v54  ;;  %1989 = vmatpush1.bf16.msra.mxu0 %v2694_v55  ;;  %v2766_v54 = vld [vmem:[#allocation10 + $0x5d8] ss:$24 sps:$4 sm:$0xff]  }
 0x22a   :  { %1908 = vmatprep.subr.bf16.mxu1 %v2699_v56  ;;  %1990 = vmatprep.subr.bf16.mxu0 %v2702_v57 }
 0x22d   :  { %1909 = vmatpush1.bf16.msra.mxu1 %v2697_v58  ;;  %1991 = vmatpush1.bf16.msra.mxu0 %v2700_v59  ;;  %v2769_v59 = vld [vmem:[#allocation10 + $0x10] ss:$24 sps:$4 sm:$0xff]  }
 0x22e   :  { %1910 = vmatprep.subr.bf16.mxu1 %v2705_v60  ;;  %1992 = vmatprep.subr.bf16.mxu0 %v2708_v61  ;;  %v2774_v61 = vld [vmem:[#allocation10 + $0x44] ss:$24 sps:$4 sm:$0xff]  }
 0x231   :  { %1911 = vmatpush1.bf16.msra.mxu1 %v2703_v62  ;;  %1993 = vmatpush1.bf16.msra.mxu0 %v2706_v63  ;;  %v2772_v62 = vld [vmem:[#allocation10 + $0x40] ss:$24 sps:$4 sm:$0xff]   ;;  %v2777_v63 = vld [vmem:[#allocation10 + $0x74] ss:$24 sps:$4 sm:$0xff]  }
 0x232   :  { %1912 = vmatprep.subr.bf16.mxu1 %v2711_v0  ;;  %1994 = vmatprep.subr.bf16.mxu0 %v2714_v2  ;;  %v2775_v0 = vld [vmem:[#allocation10 + $0x70] ss:$24 sps:$4 sm:$0xff]   ;;  %v2780_v2 = vld [vmem:[#allocation10 + $0xa4] ss:$24 sps:$4 sm:$0xff]  }
 0x235   :  { %1913 = vmatpush1.bf16.msra.mxu1 %v2709_v3  ;;  %1995 = vmatpush1.bf16.msra.mxu0 %v2712_v5  ;;  %v2778_v3 = vld [vmem:[#allocation10 + $0xa0] ss:$24 sps:$4 sm:$0xff]   ;;  %v2783_v5 = vld [vmem:[#allocation10 + $0xd4] ss:$24 sps:$4 sm:$0xff]  }
 0x236   :  { %1914 = vmatprep.subr.bf16.mxu1 %v2717_v7  ;;  %1996 = vmatprep.subr.bf16.mxu0 %v2720_v8  ;;  %v2781_v7 = vld [vmem:[#allocation10 + $0xd0] ss:$24 sps:$4 sm:$0xff]   ;;  %v2786_v8 = vld [vmem:[#allocation10 + $0x104] ss:$24 sps:$4 sm:$0xff]  }
 0x239   :  { %1915 = vmatpush1.bf16.msra.mxu1 %v2715_v9  ;;  %1997 = vmatpush1.bf16.msra.mxu0 %v2718_v10  ;;  %v2784_v9 = vld [vmem:[#allocation10 + $0x100] ss:$24 sps:$4 sm:$0xff]   ;;  %v2789_v10 = vld [vmem:[#allocation10 + $0x134] ss:$24 sps:$4 sm:$0xff]  }
 0x23a   :  { %1916 = vmatprep.subr.bf16.mxu1 %v2723_v11  ;;  %1998 = vmatprep.subr.bf16.mxu0 %v2726_v12  ;;  %v2792_v11 = vld [vmem:[#allocation10 + $0x164] ss:$24 sps:$4 sm:$0xff]   ;;  %v2790_v12 = vld [vmem:[#allocation10 + $0x160] ss:$24 sps:$4 sm:$0xff]  }
 0x23d   :  { %1917 = vmatpush1.bf16.msra.mxu1 %v2721_v13  ;;  %1999 = vmatpush1.bf16.msra.mxu0 %v2724_v14  ;;  %v2795_v13 = vld [vmem:[#allocation10 + $0x194] ss:$24 sps:$4 sm:$0xff]   ;;  %v2793_v14 = vld [vmem:[#allocation10 + $0x190] ss:$24 sps:$4 sm:$0xff]  }
 0x23e   :  { %1918 = vmatprep.subr.bf16.mxu1 %v2729_v15  ;;  %2000 = vmatprep.subr.bf16.mxu0 %v2732_v16  ;;  %v2798_v15 = vld [vmem:[#allocation10 + $0x1c4] ss:$24 sps:$4 sm:$0xff]   ;;  %v2796_v16 = vld [vmem:[#allocation10 + $0x1c0] ss:$24 sps:$4 sm:$0xff]  }
 0x241   :  { %1919 = vmatpush1.bf16.msra.mxu1 %v2727_v17  ;;  %2001 = vmatpush1.bf16.msra.mxu0 %v2730_v18  ;;  %v2801_v17 = vld [vmem:[#allocation10 + $0x1f4] ss:$24 sps:$4 sm:$0xff]   ;;  %v2799_v18 = vld [vmem:[#allocation10 + $0x1f0] ss:$24 sps:$4 sm:$0xff]  }
 0x242   :  { %1920 = vmatprep.subr.bf16.mxu1 %v2735_v19  ;;  %2002 = vmatprep.subr.bf16.mxu0 %v2738_v20  ;;  %v2804_v19 = vld [vmem:[#allocation10 + $0x224] ss:$24 sps:$4 sm:$0xff]   ;;  %v2802_v20 = vld [vmem:[#allocation10 + $0x220] ss:$24 sps:$4 sm:$0xff]  }
 0x245   :  { %1921 = vmatpush1.bf16.msra.mxu1 %v2733_v21  ;;  %2003 = vmatpush1.bf16.msra.mxu0 %v2736_v22  ;;  %v2807_v21 = vld [vmem:[#allocation10 + $0x254] ss:$24 sps:$4 sm:$0xff]   ;;  %v2805_v22 = vld [vmem:[#allocation10 + $0x250] ss:$24 sps:$4 sm:$0xff]  }
 0x246   :  { %1922 = vmatprep.subr.bf16.mxu1 %v2741_v23  ;;  %2004 = vmatprep.subr.bf16.mxu0 %v2744_v24  ;;  %v2810_v23 = vld [vmem:[#allocation10 + $0x284] ss:$24 sps:$4 sm:$0xff]   ;;  %v2808_v24 = vld [vmem:[#allocation10 + $0x280] ss:$24 sps:$4 sm:$0xff]  }
 0x249   :  { %1923 = vmatpush1.bf16.msra.mxu1 %v2739_v25  ;;  %2005 = vmatpush1.bf16.msra.mxu0 %v2742_v26  ;;  %v2813_v25 = vld [vmem:[#allocation10 + $0x2b4] ss:$24 sps:$4 sm:$0xff]   ;;  %v2811_v26 = vld [vmem:[#allocation10 + $0x2b0] ss:$24 sps:$4 sm:$0xff]  }
 0x24a   :  { %1924 = vmatprep.subr.bf16.mxu1 %v2747_v27  ;;  %2006 = vmatprep.subr.bf16.mxu0 %v2750_v28  ;;  %v2816_v27 = vld [vmem:[#allocation10 + $0x2e4] ss:$24 sps:$4 sm:$0xff]   ;;  %v2814_v28 = vld [vmem:[#allocation10 + $0x2e0] ss:$24 sps:$4 sm:$0xff]  }
 0x24d   :  { %1925 = vmatpush1.bf16.msra.mxu1 %v2745_v30  ;;  %2007 = vmatpush1.bf16.msra.mxu0 %v2748_v31  ;;  %v2819_v30 = vld [vmem:[#allocation10 + $0x314] ss:$24 sps:$4 sm:$0xff]   ;;  %v2817_v31 = vld [vmem:[#allocation10 + $0x310] ss:$24 sps:$4 sm:$0xff]  }
 0x24e   :  { %1926 = vmatprep.subr.bf16.mxu1 %v2753_v32  ;;  %2008 = vmatprep.subr.bf16.mxu0 %v2756_v33  ;;  %v2822_v32 = vld [vmem:[#allocation10 + $0x344] ss:$24 sps:$4 sm:$0xff]   ;;  %v2820_v33 = vld [vmem:[#allocation10 + $0x340] ss:$24 sps:$4 sm:$0xff]  }
 0x251   :  { %1927 = vmatpush1.bf16.msra.mxu1 %v2751_v35  ;;  %2009 = vmatpush1.bf16.msra.mxu0 %v2754_v36  ;;  %v2825_v35 = vld [vmem:[#allocation10 + $0x374] ss:$24 sps:$4 sm:$0xff]   ;;  %v2823_v36 = vld [vmem:[#allocation10 + $0x370] ss:$24 sps:$4 sm:$0xff]  }
 0x252   :  { %1928 = vmatprep.subr.bf16.mxu1 %v2759_v38  ;;  %2010 = vmatprep.subr.bf16.mxu0 %v2762_v39  ;;  %v2828_v38 = vld [vmem:[#allocation10 + $0x3a4] ss:$24 sps:$4 sm:$0xff]   ;;  %v2826_v39 = vld [vmem:[#allocation10 + $0x3a0] ss:$24 sps:$4 sm:$0xff]  }
 0x253   :  { %v660_v48 = vpop.f32.mrb[8].mxu0 }
 0x254   :  { %v661_v49 = vadd.f32 %v660_v48, %v256_v41  ;;  %v662_v50 = vpop.f32.mrb[9].mxu0  ;;  %v2831_v41 = vld [vmem:[#allocation10 + $0x3d4] ss:$24 sps:$4 sm:$0xff]   ;;  %v2838_v48 = vld [vmem:[#allocation10 + $0x460] ss:$24 sps:$4 sm:$0xff]  }
 0x255   :  { %v663_v51 = vadd.f32 %v662_v50, %v260_v42  ;;  %v664_v52 = vpop.f32.mrb[10].mxu0  ;;  %1929 = vmatpush1.bf16.msra.mxu1 %v2757_v44  ;;  %2011 = vmatpush1.bf16.msra.mxu0 %v2760_v45  ;;  %v2829_v42 = vld [vmem:[#allocation10 + $0x3d0] ss:$24 sps:$4 sm:$0xff]   ;;  %v2834_v44 = vld [vmem:[#allocation10 + $0x404] ss:$24 sps:$4 sm:$0xff]  }
 0x256   :  { %v669_v55 = vmax.f32 %v661_v49, 0.0  ;;  %v665_v56 = vpop.f32.mrb[11].mxu0  ;;  %1930 = vmatprep.subr.bf16.mxu1 %v2765_v46  ;;  %2012 = vmatprep.subr.bf16.mxu0 %v2768_v47  ;;  %v2837_v45 = vld [vmem:[#allocation10 + $0x434] ss:$24 sps:$4 sm:$0xff]   ;;  %v2835_v46 = vld [vmem:[#allocation10 + $0x430] ss:$24 sps:$4 sm:$0xff]  }
 0x257   :  { %v670_v57 = vmax.f32 %v663_v51, 0.0  ;;  %v2840_v47 = vld [vmem:[#allocation10 + $0x464] ss:$24 sps:$4 sm:$0xff]   ;;  %v2843_v49 = vld [vmem:[#allocation10 + $0x494] ss:$24 sps:$4 sm:$0xff]  }
 0x258   :  { %v3172_v60 = vpack.c.bf16 %v669_v55, %v669_v55  ;;  %v2841_v50 = vld [vmem:[#allocation10 + $0x490] ss:$24 sps:$4 sm:$0xff]   ;;  %v2846_v51 = vld [vmem:[#allocation10 + $0x4c4] ss:$24 sps:$4 sm:$0xff]   ;;  %v2844_v52 = vld [vmem:[#allocation10 + $0x4c0] ss:$24 sps:$4 sm:$0xff]  }
 0x259   :  { %v3170_v58 = vpack.c.bf16 %v670_v57, %v670_v57  ;;  %1931 = vmatpush1.bf16.msra.mxu1 %v2763_v53  ;;  %2013 = vmatpush1.bf16.msra.mxu0 %v2766_v54  ;;  %v2849_v53 = vld [vmem:[#allocation10 + $0x4f4] ss:$24 sps:$4 sm:$0xff]   ;;  %v2847_v54 = vld [vmem:[#allocation10 + $0x4f0] ss:$24 sps:$4 sm:$0xff]   ;;  %v2852_v55 = vld [vmem:[#allocation10 + $0x524] ss:$24 sps:$4 sm:$0xff]  }
 0x25a   :  { %2023 = vmatprep.subr.bf16.mxu1 %v2771_v29  ;;  %v2850_v56 = vld [vmem:[#allocation10 + $0x520] ss:$24 sps:$4 sm:$0xff]   ;;  %v2855_v29 = vld [vmem:[#allocation10 + $0x554] ss:$24 sps:$4 sm:$0xff]   ;;  %v2853_v57 = vld [vmem:[#allocation10 + $0x550] ss:$24 sps:$4 sm:$0xff]  }
 0x25b   :  { %1932 = vmatprep.mubr.bf16.mxu1 %v3170_v58  ;;  %2014 = vmatprep.mubr.bf16.mxu0 %v3170_v58 }
 0x25c   :  { %1933 = vmatmul.mubr.bf16.vlgmr.msra.gmra.mrb[0].mxu1 %v3172_v60  ;;  %2015 = vmatmul.mubr.bf16.vlgmr.msra.gmra.mrb[12].mxu0 %v3172_v60 }
 0x25d   :  { %2024 = vmatpush1.bf16.msra.mxu1 %v2769_v59  ;;  %2055 = vmatprep.mubr.bf16.mxu1 %v3154_v40  ;;  %v2787_v40 = vld [vmem:[#allocation10 + $0x130] ss:$24 sps:$4 sm:$0xff]   ;;  %v2856_v59 = vld [vmem:[#allocation10 + $0x580] ss:$24 sps:$4 sm:$0xff]  }
 0x25e   :  { %2025 = vmatprep.subr.bf16.mxu1 %v2774_v61  ;;  %v2861_v61 = vld [vmem:[#allocation10 + $0x5b4] ss:$24 sps:$4 sm:$0xff]  }
 0x261   :  { %2026 = vmatpush1.bf16.msra.mxu1 %v2772_v62  ;;  %v2859_v62 = vld [vmem:[#allocation10 + $0x5b0] ss:$24 sps:$4 sm:$0xff]  }
 0x262   :  { %2027 = vmatprep.subr.bf16.mxu1 %v2777_v63  ;;  %v2864_v63 = vld [vmem:[#allocation10 + $0x5e4] ss:$24 sps:$4 sm:$0xff]  }
 0x265   :  { %2028 = vmatpush1.bf16.msra.mxu1 %v2775_v0  ;;  %v2862_v0 = vld [vmem:[#allocation10 + $0x5e0] ss:$24 sps:$4 sm:$0xff]  }
 0x266   :  { %2029 = vmatprep.subr.bf16.mxu1 %v2780_v2  ;;  %v867_v2 = vld [vmem:[%s3212_s6] sm:$0x3f]  ;;  %s3030_s6 = smov [#allocation11]  }
 0x267   :  { %s2171_s17 = sshll.u32 %s3030_s6, 4  ;;  %s2172_s17 = int_to_ptr.vmem [resolvable:$true] %s2171_s17 }
 0x268   :  { %s2987_s18 = scalar_lea.vmem %s2172_s17, 96  ;;  %p2992_p13 = scmp.lt.s32.totalorder %s2172_s17, %s2172_s17 }
 0x269   :  { %2030 = vmatpush1.bf16.msra.mxu1 %v2778_v3  ;;  %v872_v3 = vrot.slane %v867_v2, %v3134_v4  ;;  %p2988_p12 = scmp.ne.s32.totalorder %s2172_s17, %s2987_s18  ;;  %p2993_p0 = scmp.lt.s32.totalorder %s2987_s18, %s2987_s18 }
 0x26a   :  { %2031 = vmatprep.subr.bf16.mxu1 %v2783_v5  ;;  %v880_v5 = vrot.slane %v867_v2, %v255_v34 }
 0x26b   :  { %p2994_p1 = por %p2993_p0, %p2992_p13 }
 0x26d   :  { %2032 = vmatpush1.bf16.msra.mxu1 %v2781_v7  ;;  %v876_v7 = vrot.slane %v867_v2, %v3137_v6  ;;  %v3029_v6 = vmov 1966171168   ;;  %p2995_p2 = pnand %p2994_p1, %p2988_p12 }
 0x26e   :  { %2033 = vmatprep.subr.bf16.mxu1 %v2786_v8  ;;  %v884_v8 = vrot.slane %v867_v2, %v259_v37  ;;  %v2127_v37 = vunpack.c.l.s4 %v3029_v6 }
 0x271   :  { %2034 = vmatpush1.bf16.msra.mxu1 %v2784_v9 }
 0x272   :  { %2035 = vmatprep.subr.bf16.mxu1 %v2789_v10 }
 0x275   :  { %2036 = vmatpush1.bf16.msra.mxu1 %v2787_v40 }
 0x276   :  { %2037 = vmatprep.subr.bf16.mxu1 %v2792_v11 }
 0x279   :  { %2038 = vmatpush1.bf16.msra.mxu1 %v2790_v12 }
 0x27a   :  { %2039 = vmatprep.subr.bf16.mxu1 %v2795_v13 }
 0x27d   :  { %2040 = vmatpush1.bf16.msra.mxu1 %v2793_v14 }
 0x27e   :  { %2041 = vmatprep.subr.bf16.mxu1 %v2798_v15 }
 0x281   :  { %2042 = vmatpush1.bf16.msra.mxu1 %v2796_v16 }
 0x282   :  { %2043 = vmatprep.subr.bf16.mxu1 %v2801_v17 }
 0x285   :  { %2044 = vmatpush1.bf16.msra.mxu1 %v2799_v18 }
 0x286   :  { %2045 = vmatprep.subr.bf16.mxu1 %v2804_v19 }
 0x289   :  { %2046 = vmatpush1.bf16.msra.mxu1 %v2802_v20 }
 0x28a   :  { %2047 = vmatprep.subr.bf16.mxu1 %v2807_v21  ;;  %v2128_v21 = vunpack.c.0.s8 %v2127_v37 }
 0x28d   :  { %2048 = vmatpush1.bf16.msra.mxu1 %v2805_v22 }
 0x28e   :  { %2049 = vmatprep.subr.bf16.mxu1 %v2810_v23 }
 0x291   :  { %2050 = vmatpush1.bf16.msra.mxu1 %v2808_v24  ;;  %v2131_v24 = vsub.s32 %v2128_v21, %v3131_v1 }
 0x292   :  { %2051 = vmatprep.subr.bf16.mxu1 %v2813_v25 }
 0x295   :  { %2052 = vmatpush1.bf16.msra.mxu1 %v2811_v26 }
 0x296   :  { %2053 = vmatprep.subr.bf16.mxu1 %v2816_v27 }
 0x299   :  { %2054 = vmatpush1.bf16.msra.mxu1 %v2814_v28 }
 0x29a   :  { %2064 = vmatprep.subr.bf16.mxu1 %v2819_v30 }
 0x29c   :  { %2056 = vmatmul.mubr.bf16.vlgmr.msra.gmra.mrb[4].mxu1 %v3156_v43  ;;  %v2832_v43 = vld [vmem:[#allocation10 + $0x400] ss:$24 sps:$4 sm:$0xff]  }
 0x29d   :  { %2065 = vmatpush1.bf16.msra.mxu1 %v2817_v31  ;;  %2096 = vmatprep.mubr.bf16.mxu1 %v3170_v58  ;;  %v2858_v58 = vld [vmem:[#allocation10 + $0x584] ss:$24 sps:$4 sm:$0xff]  }
 0x29e   :  { %2066 = vmatprep.subr.bf16.mxu1 %v2822_v32 }
 0x2a1   :  { %2067 = vmatpush1.bf16.msra.mxu1 %v2820_v33  ;;  %v887_v33 = vsub.s32 4, %v3131_v1 }
 0x2a2   :  { %2068 = vmatprep.subr.bf16.mxu1 %v2825_v35  ;;  %v891_v35 = vsub.s32 5, %v3131_v1 }
 0x2a5   :  { %2069 = vmatpush1.bf16.msra.mxu1 %v2823_v36  ;;  %v888_v36 = vrot.slane %v867_v2, %v887_v33 }
 0x2a6   :  { %2070 = vmatprep.subr.bf16.mxu1 %v2828_v38  ;;  %v892_v38 = vrot.slane %v867_v2, %v891_v35 }
 0x2a9   :  { %2071 = vmatpush1.bf16.msra.mxu1 %v2826_v39 }
 0x2aa   :  { %2072 = vmatprep.subr.bf16.mxu1 %v2831_v41 }
 0x2ad   :  { %2073 = vmatpush1.bf16.msra.mxu1 %v2829_v42 }
 0x2ae   :  { %2074 = vmatprep.subr.bf16.mxu1 %v2834_v44 }
 0x2b1   :  { %2075 = vmatpush1.bf16.msra.mxu1 %v2832_v43 }
 0x2b2   :  { %2076 = vmatprep.subr.bf16.mxu1 %v2837_v45 }
 0x2b5   :  { %2077 = vmatpush1.bf16.msra.mxu1 %v2835_v46 }
 0x2b6   :  { %2078 = vmatprep.subr.bf16.mxu1 %v2840_v47 }
 0x2b9   :  { %2079 = vmatpush1.bf16.msra.mxu1 %v2838_v48 }
 0x2ba   :  { %2080 = vmatprep.subr.bf16.mxu1 %v2843_v49 }
 0x2bd   :  { %2081 = vmatpush1.bf16.msra.mxu1 %v2841_v50 }
 0x2be   :  { %2082 = vmatprep.subr.bf16.mxu1 %v2846_v51 }
 0x2c1   :  { %2083 = vmatpush1.bf16.msra.mxu1 %v2844_v52 }
 0x2c2   :  { %2084 = vmatprep.subr.bf16.mxu1 %v2849_v53 }
 0x2c5   :  { %2085 = vmatpush1.bf16.msra.mxu1 %v2847_v54 }
 0x2c6   :  { %2086 = vmatprep.subr.bf16.mxu1 %v2852_v55 }
 0x2c9   :  { %2087 = vmatpush1.bf16.msra.mxu1 %v2850_v56 }
 0x2ca   :  { %2088 = vmatprep.subr.bf16.mxu1 %v2855_v29 }
 0x2cd   :  { %2089 = vmatpush1.bf16.msra.mxu1 %v2853_v57 }
 0x2ce   :  { %2090 = vmatprep.subr.bf16.mxu1 %v2858_v58 }
 0x2d1   :  { %2091 = vmatpush1.bf16.msra.mxu1 %v2856_v59 }
 0x2d2   :  { %2092 = vmatprep.subr.bf16.mxu1 %v2861_v61 }
 0x2d5   :  { %2093 = vmatpush1.bf16.msra.mxu1 %v2859_v62 }
 0x2d6   :  { %2094 = vmatprep.subr.bf16.mxu1 %v2864_v63 }
 0x2d9   :  { %2095 = vmatpush1.bf16.msra.mxu1 %v2862_v0 }
 0x2dc   :  { %2097 = vmatmul.mubr.bf16.vlgmr.msra.gmra.mrb[4].mxu1 %v3172_v60 }
 0x32f   :  { %v1934_v9 = vpop.f32.mrb[0].mxu1  ;;  %v2016_v10 = vpop.f32.mrb[12].mxu0 }
 0x330   :  { %v2443_v40 = vadd.f32 %v1934_v9, %v872_v3  ;;  %v2445_v11 = vadd.f32 %v2016_v10, %v880_v5  ;;  %v1936_v12 = vpop.f32.mrb[1].mxu1  ;;  %v2018_v60 = vpop.f32.mrb[13].mxu0 }
 0x331   :  { %v2444_v13 = vadd.f32 %v1936_v12, %v876_v7  ;;  %v2446_v14 = vadd.f32 %v2018_v60, %v884_v8  ;;  %v1938_v15 = vpop.f32.mrb[2].mxu1  ;;  %v2020_v16 = vpop.f32.mrb[14].mxu0 }
 0x332   :  { %v2105_v17 = vpack.c.bf16 %v2443_v40, %v2443_v40  ;;  %v2107_v4 = vpack.c.bf16 %v2445_v11, %v2445_v11  ;;  %v1939_v18 = vpop.f32.mrb[3].mxu1  ;;  %v2021_v19 = vpop.f32.mrb[15].mxu0 }
 0x333   :  { %v2106_v34 = vpack.c.bf16 %v2444_v13, %v2444_v13  ;;  %v2108_v20 = vpack.c.bf16 %v2446_v14, %v2446_v14 }
 0x334   :  { %2865 = vtanh.bf16 %v2105_v17 }
 0x335   :  { %2867 = vtanh.bf16 %v2107_v4 }
 0x336   :  { %2869 = vtanh.bf16 %v2106_v34 }
 0x337   :  { %2871 = vtanh.bf16 %v2108_v20 }
 0x33f   :  { %v2866_v22 = vpop.eup %2865 }
 0x340   :  { %v2868_v23 = vpop.eup %2867 }
 0x341   :  { %v2870_v25 = vpop.eup %2869 }
 0x342   :  { %v2872_v26 = vpop.eup %2871  ;;  %v2123_v27 = vcombine.low %v2866_v22, %v2870_v25 }
 0x343   :  { %v2124_v28 = vcombine.low %v2868_v23, %v2872_v26 }
 0x344   :  { %v2132_v30 = vrot.slane %v2123_v27, %v2131_v24 }
 0x345   :  { %v2139_v31 = vrot.slane %v2124_v28, %v2131_v24 }
 0x347   :  { %v2147_v32 = vcombine.low %v2132_v30, %v2139_v31 }
 0x349   :  { %v2154_v52 = vrot.slane %v2147_v32, %v2131_v24 }
 0x3af   :  { %v2098_v39 = vpop.f32.mrb[4].mxu1 }
 0x3b0   :  { %v2447_v41 = vadd.f32 %v2098_v39, %v888_v36  ;;  %v2100_v42 = vpop.f32.mrb[5].mxu1 }
 0x3b1   :  { %v2448_v44 = vadd.f32 %v2100_v42, %v892_v38  ;;  %v2102_v43 = vpop.f32.mrb[6].mxu1 }
 0x3b2   :  { %v2109_v45 = vpack.c.bf16 %v2447_v41, %v2447_v41  ;;  %v2103_v46 = vpop.f32.mrb[7].mxu1 }
 0x3b3   :  { %v2110_v47 = vpack.c.bf16 %v2448_v44, %v2448_v44 }
 0x3b4   :  { %2873 = vtanh.bf16 %v2109_v45 }
 0x3b5   :  { %2875 = vtanh.bf16 %v2110_v47 }
 0x3bf   :  { %v2874_v48 = vpop.eup %2873 }
 0x3c0   :  { %v2876_v49 = vpop.eup %2875 }
 0x3c1   :  { %v2125_v50 = vcombine.low %v2874_v48, %v2876_v49 }
 0x3c3   :  { %v2146_v51 = vrot.slane %v2125_v50, %v2131_v24 }
 0x3c5   :  { %v2161_v1 = vrot.slane %v2146_v51, %v2131_v24 }
 0x3c7   :  { %v2162_v53 = vcombine.low %v2154_v52, %v2161_v1 }
 0x3c9   :  { %2164 = vst [vmem:[#allocation11] sm:$0x3f] %v2162_v53 }
 0x3ca   :  { %2998 = shalt.err (!%p2995_p2)
}
 0x3cb   :  { %s2999_s21 = scalar_lea.hbm %s3213_s7, 96 }
 0x3cc   :  { %p3000_p3 = scmp.ne.s32.totalorder %s3213_s7, %s2999_s21  ;;  %p3003_p4 = scmp.lt.u32.totalorder %s2999_s21, %s3213_s7 }
 0x3ce   :  { %p3005_p5 = pnand %p3003_p4, %p3000_p3 }
 0x3d0   :  { %3008 = shalt.err (!%p3005_p5)
}
 0x3d1   :  { %2174 = dma.vmem_to_hbm [thread:$0]  %s2172_s17, 96, %s3213_s7, [#allocation4]  }
 0x3d2   :  { %3015 = dma.done.wait [#allocation4], 96  }
 0x3d3   :  { %3016 = vsyncadd [#allocation4], 4294967200 }
 0x3d4   :  { %2178 = vsyncpa [#allocation3], 1 }
 0x3d5   :  { %2179 = vsyncpa [#allocation6], 1 }
 0x3d6   :  { %2180 = vsyncpa [#allocation9], 1 }
 0x3d7   :  { %2181 = vsyncpa [#allocation4], 1 }

</bundles_post_ra>
